<compile_context>
chip_gen: v7x
topology: tpu7x:2x2x1
jax: 0.10.0
libtpu: 0.0.40
codegen_flags: <defaults>
</compile_context>

<pallas_src>
import jax
import jax.numpy as jnp
from jax.experimental import pallas as pl
from jax.experimental.pallas import tpu as pltpu


def _round_up(x, m):
    return ((x + m - 1) // m) * m


# ----------------------------------------------------------------------------
# Kernel 1 & 3: generic  out = x @ w + b  (bf16 operands, f32 accumulate)
# ----------------------------------------------------------------------------
def _matmul_bias_kernel(x_ref, w_ref, b_ref, out_ref):
    out_ref[...] = (jnp.dot(x_ref[...], w_ref[...],
                            preferred_element_type=jnp.float32)
                    + b_ref[...])


# ----------------------------------------------------------------------------
# Kernel 2: sequential 2-layer LSTM recurrence, whole T loop in one invocation.
#   gates_in_ref : [T, B, 4H] f32   (precomputed x @ W_ih0 + b0)
#   w_hh0/w_ih1/w_hh1 : [H, 4H] bf16,  b1 : [1, 4H] f32
#   h1_out_ref   : [T, B, H] bf16   (fed to the deferred output projection)
# ----------------------------------------------------------------------------
def _recurrence_kernel(gates_in_ref, w_hh0_ref, w_ih1_ref, w_hh1_ref, b1_ref,
                       h1_out_ref):
    T, B, G = gates_in_ref.shape
    H = G // 4

    w_hh0 = w_hh0_ref[...]
    w_ih1 = w_ih1_ref[...]
    w_hh1 = w_hh1_ref[...]
    b1 = b1_ref[...]

    def gate_split(gates):
        # PyTorch gate order (i, f, g, o); elementwise math stays f32.
        i = jax.nn.sigmoid(gates[:, 0 * H:1 * H])
        f = jax.nn.sigmoid(gates[:, 1 * H:2 * H])
        g = jnp.tanh(gates[:, 2 * H:3 * H])
        o = jax.nn.sigmoid(gates[:, 3 * H:4 * H])
        return i, f, g, o

    def step(t, carry):
        h0, c0, h1, c1 = carry
        # ---- layer 0: input projection (+b0) already folded into gates_in ----
        g0 = gates_in_ref[t] + jnp.dot(h0.astype(jnp.bfloat16), w_hh0,
                                       preferred_element_type=jnp.float32)
        i0, f0, gg0, o0 = gate_split(g0)
        c0n = f0 * c0 + i0 * gg0
        h0n = o0 * jnp.tanh(c0n)
        # TODO(synk): inter-layer LSTM dropout + embedding dropout are
        # eval-mode identity here (no training-mode dropout).
        # ---- layer 1 ----
        g1 = (jnp.dot(h0n.astype(jnp.bfloat16), w_ih1,
                      preferred_element_type=jnp.float32)
              + jnp.dot(h1.astype(jnp.bfloat16), w_hh1,
                        preferred_element_type=jnp.float32)
              + b1)
        i1, f1, gg1, o1 = gate_split(g1)
        c1n = f1 * c1 + i1 * gg1
        h1n = o1 * jnp.tanh(c1n)
        h1_out_ref[t] = h1n.astype(h1_out_ref.dtype)
        return (h0n, c0n, h1n, c1n)

    z = jnp.zeros((B, H), jnp.float32)
    jax.lax.fori_loop(0, T, step, (z, z, z, z), unroll=(T <= 32))


# ----------------------------------------------------------------------------
# Wrapper: prepass (input proj) -> recurrence -> deferred output projection
# ----------------------------------------------------------------------------
def decoder_lstm_pallas(inputs, params):
    """inputs: [T, B, E] float32 -> logits [T, B, V] float32."""
    T, B, E = inputs.shape
    H = params["w_hh0_T"].shape[0]
    V = params["w_out_T"].shape[1]

    # ---- layout glue: pad batch to sublane multiple, cast MXU weights to bf16 ----
    Bp = _round_up(B, 8)
    if Bp != B:
        inputs = jnp.pad(inputs, ((0, 0), (0, Bp - B), (0, 0)))
    TB = T * Bp

    bf16 = jnp.bfloat16
    w_ih0 = params["w_ih0_T"].astype(bf16)
    w_hh0 = params["w_hh0_T"].astype(bf16)
    w_ih1 = params["w_ih1_T"].astype(bf16)
    w_hh1 = params["w_hh1_T"].astype(bf16)

    # Lane-dense output projection: pad V up to a multiple of the N tile.
    TN = 128 if V <= 128 else 256
    Vp = _round_up(V, TN)
    w_out = params["w_out_T"].astype(bf16)
    b_out = params["b_out"]
    if Vp != V:
        w_out = jnp.pad(w_out, ((0, 0), (0, Vp - V)))
        b_out = jnp.pad(b_out, ((0, 0), (0, Vp - V)))

    # ---- 1) hoisted input projection: gates_in = x @ W_ih0 + b0 (one big matmul)
    x2d = inputs.reshape(TB, E).astype(bf16)
    gates_in = pl.pallas_call(
        _matmul_bias_kernel,
        out_shape=jax.ShapeDtypeStruct((TB, 4 * H), jnp.float32),
        grid_spec=pltpu.PrefetchScalarGridSpec(
            num_scalar_prefetch=0,
            grid=(1,),
            in_specs=[pl.BlockSpec((TB, E), lambda i: (0, 0)),
                      pl.BlockSpec((E, 4 * H), lambda i: (0, 0)),
                      pl.BlockSpec((1, 4 * H), lambda i: (0, 0))],
            out_specs=pl.BlockSpec((TB, 4 * H), lambda i: (0, 0)),
        ),
        compiler_params=pltpu.CompilerParams(
            dimension_semantics=("parallel",)),
    )(x2d, w_ih0, params["b0"])
    gates_in = gates_in.reshape(T, Bp, 4 * H)

    # ---- 2) sequential recurrence: single kernel invocation, fori_loop over T ----
    h1_all = pl.pallas_call(
        _recurrence_kernel,
        out_shape=jax.ShapeDtypeStruct((T, Bp, H), bf16),
        grid_spec=pltpu.PrefetchScalarGridSpec(
            num_scalar_prefetch=0,
            grid=(1,),
            in_specs=[pl.BlockSpec((T, Bp, 4 * H), lambda i: (0, 0, 0)),
                      pl.BlockSpec((H, 4 * H), lambda i: (0, 0)),
                      pl.BlockSpec((H, 4 * H), lambda i: (0, 0)),
                      pl.BlockSpec((H, 4 * H), lambda i: (0, 0)),
                      pl.BlockSpec((1, 4 * H), lambda i: (0, 0))],
            out_specs=pl.BlockSpec((T, Bp, H), lambda i: (0, 0, 0)),
        ),
        compiler_params=pltpu.CompilerParams(
            dimension_semantics=("arbitrary",)),  # serial recurrence
    )(gates_in, w_hh0, w_ih1, w_hh1, params["b1"])

    # ---- 3) deferred output projection, tiled over V (parallel / megacore) ----
    h1_2d = h1_all.reshape(TB, H)
    logits2d = pl.pallas_call(
        _matmul_bias_kernel,
        out_shape=jax.ShapeDtypeStruct((TB, Vp), jnp.float32),
        grid_spec=pltpu.PrefetchScalarGridSpec(
            num_scalar_prefetch=0,
            grid=(Vp // TN,),
            in_specs=[pl.BlockSpec((TB, H), lambda j: (0, 0)),
                      pl.BlockSpec((H, TN), lambda j: (0, j)),
                      pl.BlockSpec((1, TN), lambda j: (0, j))],
            out_specs=pl.BlockSpec((TB, TN), lambda j: (0, j)),
        ),
        compiler_params=pltpu.CompilerParams(
            dimension_semantics=("parallel",),
            vmem_limit_bytes=32 * 1024 * 1024),
        # TODO(synk): for production sizes (H~512, V~32k) also tile the T*B rows
        # and raise vmem_limit_bytes per generation (keep < 64 MiB on v7x).
    )(h1_2d, w_out, b_out)

    logits = logits2d.reshape(T, Bp, Vp)
    return logits[:, :B, :V]


def decoder_forward(features, captions, params):
    """features: [B, E] float32, captions: [S, B] int32 -> [S+1, B, V] float32."""
    embeddings = jnp.take(params["embed"], captions, axis=0)  # [S, B, E]
    # self.dropout(embeddings): eval-mode identity.
    feats = features[None, :, :]                              # [1, B, E]
    S, B, E = embeddings.shape
    # Mirror the PyTorch module's repeat/truncate when feature batch mismatches.
    if feats.shape[1] != B:
        if feats.shape[1] < B:
            feats = jnp.tile(feats, (1, B // feats.shape[1], 1))
        else:
            feats = feats[:, :B, :]
    inputs = jnp.concatenate([feats, embeddings], axis=0)     # [S+1, B, E]
    return decoder_lstm_pallas(inputs, params)


# ----------------------------------------------------------------------------
# Parameters + pure-JAX reference (same bf16-MXU / f32-elementwise recipe)
# ----------------------------------------------------------------------------
def _make_params(key, embed_size, hidden_size, vocab_size):
    ks = jax.random.split(key, 11)
    H = hidden_size
    scale = 1.0 / jnp.sqrt(H)
    u = lambda k, shape: jax.random.uniform(k, shape, jnp.float32, -scale, scale)
    return {
        "embed":   jax.random.normal(ks[0], (vocab_size, embed_size), jnp.float32) * 0.1,
        # layer 0: input E -> 4H ; layer 1: input H -> 4H (weights pre-transposed)
        "w_ih0_T": u(ks[1], (embed_size, 4 * H)),
        "w_hh0_T": u(ks[2], (H, 4 * H)),
        "b0":      u(ks[3], (1, 4 * H)) + u(ks[4], (1, 4 * H)),   # b_ih + b_hh fused
        "w_ih1_T": u(ks[5], (H, 4 * H)),
        "w_hh1_T": u(ks[6], (H, 4 * H)),
        "b1":      u(ks[7], (1, 4 * H)) + u(ks[8], (1, 4 * H)),   # independent keys
        "w_out_T": u(ks[9], (H, vocab_size)),
        "b_out":   u(ks[10], (1, vocab_size)),
    }


def _reference_forward(features, captions, params):
    """Pure-JAX reference (lax.scan LSTM) using the same precision recipe
    (bf16 MXU operands, f32 accumulation, f32 elementwise)."""
    embeddings = jnp.take(params["embed"], captions, axis=0)
    feats = features[None]
    B = embeddings.shape[1]
    if feats.shape[1] != B:
        if feats.shape[1] < B:
            feats = jnp.tile(feats, (1, B // feats.shape[1], 1))
        else:
            feats = feats[:, :B, :]
    inputs = jnp.concatenate([feats, embeddings], axis=0)
    H = params["w_hh0_T"].shape[0]

    bf = lambda a: a.astype(jnp.bfloat16)
    mm = lambda a, b: jnp.dot(bf(a), bf(b), preferred_element_type=jnp.float32)

    def cell(x, h, c, w_ih, w_hh, b):
        gates = mm(x, w_ih) + b[0] + mm(h, w_hh)
        i = jax.nn.sigmoid(gates[:, 0:H])
        f = jax.nn.sigmoid(gates[:, H:2 * H])
        g = jnp.tanh(gates[:, 2 * H:3 * H])
        o = jax.nn.sigmoid(gates[:, 3 * H:4 * H])
        c_new = f * c + i * g
        h_new = o * jnp.tanh(c_new)
        return h_new, c_new

    def step(carry, x):
        h0, c0, h1, c1 = carry
        h0, c0 = cell(x, h0, c0, params["w_ih0_T"], params["w_hh0_T"], params["b0"])
        h1, c1 = cell(h0, h1, c1, params["w_ih1_T"], params["w_hh1_T"], params["b1"])
        return (h0, c0, h1, c1), h1

    z = jnp.zeros((B, H), jnp.float32)
    _, hiddens = jax.lax.scan(step, (z, z, z, z), inputs)
    return mm(hiddens, params["w_out_T"]) + params["b_out"][0]


if __name__ == "__main__":
    embed_size, hidden_size, vocab_size, num_layers = 32, 32, 64, 2
    batch, seq_len = 4, 8

    key = jax.random.PRNGKey(0)
    kp, kf, kc = jax.random.split(key, 3)
    params = _make_params(kp, embed_size, hidden_size, vocab_size)

    features = jax.random.normal(kf, (batch, embed_size), jnp.float32)
    captions = jax.random.randint(kc, (seq_len, batch), 0, vocab_size, jnp.int32)

    fwd = jax.jit(decoder_forward)
    out = fwd(features, captions, params)
    out = jax.block_until_ready(out)

    ref = _reference_forward(features, captions, params)
    assert out.shape == (seq_len + 1, batch, vocab_size), out.shape
    err = float(jnp.max(jnp.abs(out - ref)))
    assert jnp.allclose(out, ref, atol=2e-3, rtol=2e-3), err

    print("KERNEL_OK")
</pallas_src>

<mosaic_0001>
module attributes {stable_mosaic.version = 11 : i64} {
  func.func @_matmul_bias_kernel(%arg0: i32, %arg1: memref<72x32xbf16, #tpu.memory_space<vmem>>, %arg2: memref<32x128xbf16, #tpu.memory_space<vmem>>, %arg3: memref<1x128xf32, #tpu.memory_space<vmem>>, %arg4: memref<72x128xf32, #tpu.memory_space<vmem>>) attributes {dimension_semantics = [#tpu.dimension_semantics<parallel>], iteration_bounds = array<i64: 1>, scalar_prefetch = 0 : i64, scratch_operands = 0 : i64, tpu.core_type = #tpu.core_type<tc>, window_params = [{pipeline_mode = #tpu.pipeline_mode<synchronous>, transform_indices = @transform_0, window_bounds = array<i64: 72, 32>}, {pipeline_mode = #tpu.pipeline_mode<synchronous>, transform_indices = @transform_1, window_bounds = array<i64: 32, 128>}, {pipeline_mode = #tpu.pipeline_mode<synchronous>, transform_indices = @transform_2, window_bounds = array<i64: 1, 128>}, {pipeline_mode = #tpu.pipeline_mode<synchronous>, transform_indices = @transform_3, window_bounds = array<i64: 72, 128>}]} {
    %c0 = arith.constant 0 : index
    %c0_0 = arith.constant 0 : index
    %0 = vector.load %arg1[%c0, %c0_0] : memref<72x32xbf16, #tpu.memory_space<vmem>>, vector<72x32xbf16>
    %c0_1 = arith.constant 0 : index
    %c0_2 = arith.constant 0 : index
    %1 = vector.load %arg2[%c0_1, %c0_2] : memref<32x128xbf16, #tpu.memory_space<vmem>>, vector<32x128xbf16>
    %cst = arith.constant dense<0.000000e+00> : vector<72x128xf32>
    %2 = tpu.matmul %0, %1, %cst {dimension_numbers = #tpu.dot_dimension_numbers<[1], [0], [0], [1], [0, 0, 1, 1], [], []>} : vector<72x32xbf16>, vector<32x128xbf16>, vector<72x128xf32> -> vector<72x128xf32>
    %c0_3 = arith.constant 0 : index
    %c0_4 = arith.constant 0 : index
    %3 = vector.load %arg3[%c0_3, %c0_4] : memref<1x128xf32, #tpu.memory_space<vmem>>, vector<1x128xf32>
    %4 = vector.broadcast %3 : vector<1x128xf32> to vector<72x128xf32>
    %5 = arith.addf %2, %4 : vector<72x128xf32>
    %c0_5 = arith.constant 0 : index
    %c0_6 = arith.constant 0 : index
    %6 = vector.load %arg4[%c0_5, %c0_6] : memref<72x128xf32, #tpu.memory_space<vmem>>, vector<72x128xf32>
    tpu.vector_store %arg4[%c0_5, %c0_6], %5 {strides = array<i32>} : memref<72x128xf32, #tpu.memory_space<vmem>>, vector<72x128xf32>,
    return
  }
  func.func @transform_0(%arg0: i32) -> (i32, i32) {
    %c0_i32 = arith.constant 0 : i32
    %c0_i32_0 = arith.constant 0 : i32
    %c0_i32_1 = arith.constant 0 : i32
    return %c0_i32, %c0_i32_0 : i32, i32
  }
  func.func @transform_1(%arg0: i32) -> (i32, i32) {
    %c0_i32 = arith.constant 0 : i32
    %c0_i32_0 = arith.constant 0 : i32
    %c0_i32_1 = arith.constant 0 : i32
    return %c0_i32, %c0_i32_0 : i32, i32
  }
  func.func @transform_2(%arg0: i32) -> (i32, i32) {
    %c0_i32 = arith.constant 0 : i32
    %c0_i32_0 = arith.constant 0 : i32
    %c0_i32_1 = arith.constant 0 : i32
    return %c0_i32, %c0_i32_0 : i32, i32
  }
  func.func @transform_3(%arg0: i32) -> (i32, i32) {
    %c0_i32 = arith.constant 0 : i32
    %c0_i32_0 = arith.constant 0 : i32
    %c0_i32_1 = arith.constant 0 : i32
    return %c0_i32, %c0_i32_0 : i32, i32
  }
}

module attributes {stable_mosaic.version = 11 : i64} {
  func.func @_matmul_bias_kernel(%arg0: i32, %arg1: memref<72x32xbf16, #tpu.memory_space<vmem>>, %arg2: memref<32x128xbf16, #tpu.memory_space<vmem>>, %arg3: memref<1x128xf32, #tpu.memory_space<vmem>>, %arg4: memref<72x128xf32, #tpu.memory_space<vmem>>) attributes {dimension_semantics = [#tpu.dimension_semantics<parallel>], iteration_bounds = array<i64: 1>, scalar_prefetch = 0 : i64, scratch_operands = 0 : i64, tpu.core_type = #tpu.core_type<tc>, window_params = [{pipeline_mode = #tpu.pipeline_mode<synchronous>, transform_indices = @transform_0, window_bounds = array<i64: 72, 32>}, {transform_indices = @transform_1, window_bounds = array<i64: 32, 128>}, {transform_indices = @transform_2, window_bounds = array<i64: 1, 128>}, {transform_indices = @transform_3, window_bounds = array<i64: 72, 128>}]} {
    %c0 = arith.constant 0 : index
    %c0_0 = arith.constant 0 : index
    %0 = vector.load %arg1[%c0, %c0_0] : memref<72x32xbf16, #tpu.memory_space<vmem>>, vector<72x32xbf16>
    %c0_1 = arith.constant 0 : index
    %c0_2 = arith.constant 0 : index
    %1 = vector.load %arg2[%c0_1, %c0_2] : memref<32x128xbf16, #tpu.memory_space<vmem>>, vector<32x128xbf16>
    %cst = arith.constant dense<0.000000e+00> : vector<72x128xf32>
    %2 = tpu.matmul %0, %1, %cst {dimension_numbers = #tpu.dot_dimension_numbers<[1], [0], [0], [1], [0, 0, 1, 1], [], []>} : vector<72x32xbf16>, vector<32x128xbf16>, vector<72x128xf32> -> vector<72x128xf32>
    %c0_3 = arith.constant 0 : index
    %c0_4 = arith.constant 0 : index
    %3 = vector.load %arg3[%c0_3, %c0_4] : memref<1x128xf32, #tpu.memory_space<vmem>>, vector<1x128xf32>
    %4 = vector.broadcast %3 : vector<1x128xf32> to vector<72x128xf32>
    %5 = arith.addf %2, %4 : vector<72x128xf32>
    %c0_5 = arith.constant 0 : index
    %c0_6 = arith.constant 0 : index
    %6 = vector.load %arg4[%c0_5, %c0_6] : memref<72x128xf32, #tpu.memory_space<vmem>>, vector<72x128xf32>
    tpu.vector_store %arg4[%c0_5, %c0_6], %5 {strides = array<i32>} : memref<72x128xf32, #tpu.memory_space<vmem>>, vector<72x128xf32>,
    return
  }
  func.func @transform_0(%arg0: i32) -> (i32, i32) {
    %c0_i32 = arith.constant 0 : i32
    %c0_i32_0 = arith.constant 0 : i32
    %c0_i32_1 = arith.constant 0 : i32
    return %c0_i32, %c0_i32_0 : i32, i32
  }
  func.func @transform_1(%arg0: i32) -> (i32, i32) {
    %c0_i32 = arith.constant 0 : i32
    %c0_i32_0 = arith.constant 0 : i32
    return %c0_i32, %arg0 : i32, i32
  }
  func.func @transform_2(%arg0: i32) -> (i32, i32) {
    %c0_i32 = arith.constant 0 : i32
    %c0_i32_0 = arith.constant 0 : i32
    return %c0_i32, %arg0 : i32, i32
  }
  func.func @transform_3(%arg0: i32) -> (i32, i32) {
    %c0_i32 = arith.constant 0 : i32
    %c0_i32_0 = arith.constant 0 : i32
    return %c0_i32, %arg0 : i32, i32
  }
}

module attributes {stable_mosaic.version = 11 : i64} {
  func.func @_recurrence_kernel(%arg0: i32, %arg1: memref<9x8x128xf32, #tpu.memory_space<vmem>>, %arg2: memref<32x128xbf16, #tpu.memory_space<vmem>>, %arg3: memref<32x128xbf16, #tpu.memory_space<vmem>>, %arg4: memref<32x128xbf16, #tpu.memory_space<vmem>>, %arg5: memref<1x128xf32, #tpu.memory_space<vmem>>, %arg6: memref<9x8x32xbf16, #tpu.memory_space<vmem>>) attributes {dimension_semantics = [#tpu.dimension_semantics<arbitrary>], iteration_bounds = array<i64: 1>, scalar_prefetch = 0 : i64, scratch_operands = 0 : i64, tpu.core_type = #tpu.core_type<tc>, window_params = [{pipeline_mode = #tpu.pipeline_mode<synchronous>, transform_indices = @transform_0, window_bounds = array<i64: 9, 8, 128>}, {pipeline_mode = #tpu.pipeline_mode<synchronous>, transform_indices = @transform_1, window_bounds = array<i64: 32, 128>}, {pipeline_mode = #tpu.pipeline_mode<synchronous>, transform_indices = @transform_2, window_bounds = array<i64: 32, 128>}, {pipeline_mode = #tpu.pipeline_mode<synchronous>, transform_indices = @transform_3, window_bounds = array<i64: 32, 128>}, {pipeline_mode = #tpu.pipeline_mode<synchronous>, transform_indices = @transform_4, window_bounds = array<i64: 1, 128>}, {pipeline_mode = #tpu.pipeline_mode<synchronous>, transform_indices = @transform_5, window_bounds = array<i64: 9, 8, 32>}]} {
    %c0 = arith.constant 0 : index
    %c0_0 = arith.constant 0 : index
    %0 = vector.load %arg2[%c0, %c0_0] : memref<32x128xbf16, #tpu.memory_space<vmem>>, vector<32x128xbf16>
    %c0_1 = arith.constant 0 : index
    %c0_2 = arith.constant 0 : index
    %1 = vector.load %arg3[%c0_1, %c0_2] : memref<32x128xbf16, #tpu.memory_space<vmem>>, vector<32x128xbf16>
    %c0_3 = arith.constant 0 : index
    %c0_4 = arith.constant 0 : index
    %2 = vector.load %arg4[%c0_3, %c0_4] : memref<32x128xbf16, #tpu.memory_space<vmem>>, vector<32x128xbf16>
    %c0_5 = arith.constant 0 : index
    %c0_6 = arith.constant 0 : index
    %3 = vector.load %arg5[%c0_5, %c0_6] : memref<1x128xf32, #tpu.memory_space<vmem>>, vector<1x128xf32>
    %cst = arith.constant 0.000000e+00 : f32
    %4 = vector.broadcast %cst : f32 to vector<8x32xf32>
    %c0_i32 = arith.constant 0 : i32
    %5 = arith.index_cast %c0_i32 : i32 to index
    %c0_7 = arith.constant 0 : index
    %c0_8 = arith.constant 0 : index
    %6 = vector.load %arg1[%5, %c0_7, %c0_8] : memref<9x8x128xf32, #tpu.memory_space<vmem>>, vector<1x8x128xf32>
    %7 = vector.shape_cast %6 : vector<1x8x128xf32> to vector<8x128xf32>
    %8 = arith.truncf %4 : vector<8x32xf32> to vector<8x32xbf16>
    %cst_9 = arith.constant dense<0.000000e+00> : vector<8x128xf32>
    %9 = tpu.matmul %8, %0, %cst_9 {dimension_numbers = #tpu.dot_dimension_numbers<[1], [0], [0], [1], [0, 0, 1, 1], [], []>} : vector<8x32xbf16>, vector<32x128xbf16>, vector<8x128xf32> -> vector<8x128xf32>
    %10 = arith.addf %7, %9 : vector<8x128xf32>
    %11 = vector.extract_strided_slice %10 {offsets = [0, 0], sizes = [8, 32], strides = [1, 1]} : vector<8x128xf32> to vector<8x32xf32>
    %12 = arith.negf %11 : vector<8x32xf32>
    %13 = math.exp %12 : vector<8x32xf32>
    %cst_10 = arith.constant 1.000000e+00 : f32
    %14 = vector.broadcast %cst_10 : f32 to vector<8x32xf32>
    %15 = arith.addf %14, %13 : vector<8x32xf32>
    %16 = arith.divf %14, %15 : vector<8x32xf32>
    %17 = vector.extract_strided_slice %10 {offsets = [0, 32], sizes = [8, 32], strides = [1, 1]} : vector<8x128xf32> to vector<8x32xf32>
    %18 = arith.negf %17 : vector<8x32xf32>
    %19 = math.exp %18 : vector<8x32xf32>
    %cst_11 = arith.constant 1.000000e+00 : f32
    %20 = vector.broadcast %cst_11 : f32 to vector<8x32xf32>
    %21 = arith.addf %20, %19 : vector<8x32xf32>
    %22 = arith.divf %20, %21 : vector<8x32xf32>
    %23 = vector.extract_strided_slice %10 {offsets = [0, 64], sizes = [8, 32], strides = [1, 1]} : vector<8x128xf32> to vector<8x32xf32>
    %24 = math.tanh %23 : vector<8x32xf32>
    %25 = vector.extract_strided_slice %10 {offsets = [0, 96], sizes = [8, 32], strides = [1, 1]} : vector<8x128xf32> to vector<8x32xf32>
    %26 = arith.negf %25 : vector<8x32xf32>
    %27 = math.exp %26 : vector<8x32xf32>
    %cst_12 = arith.constant 1.000000e+00 : f32
    %28 = vector.broadcast %cst_12 : f32 to vector<8x32xf32>
    %29 = arith.addf %28, %27 : vector<8x32xf32>
    %30 = arith.divf %28, %29 : vector<8x32xf32>
    %31 = arith.mulf %22, %4 : vector<8x32xf32>
    %32 = arith.mulf %16, %24 : vector<8x32xf32>
    %33 = arith.addf %31, %32 : vector<8x32xf32>
    %34 = math.tanh %33 : vector<8x32xf32>
    %35 = arith.mulf %30, %34 : vector<8x32xf32>
    %36 = arith.truncf %35 : vector<8x32xf32> to vector<8x32xbf16>
    %cst_13 = arith.constant dense<0.000000e+00> : vector<8x128xf32>
    %37 = tpu.matmul %36, %1, %cst_13 {dimension_numbers = #tpu.dot_dimension_numbers<[1], [0], [0], [1], [0, 0, 1, 1], [], []>} : vector<8x32xbf16>, vector<32x128xbf16>, vector<8x128xf32> -> vector<8x128xf32>
    %38 = arith.truncf %4 : vector<8x32xf32> to vector<8x32xbf16>
    %cst_14 = arith.constant dense<0.000000e+00> : vector<8x128xf32>
    %39 = tpu.matmul %38, %2, %cst_14 {dimension_numbers = #tpu.dot_dimension_numbers<[1], [0], [0], [1], [0, 0, 1, 1], [], []>} : vector<8x32xbf16>, vector<32x128xbf16>, vector<8x128xf32> -> vector<8x128xf32>
    %40 = arith.addf %37, %39 : vector<8x128xf32>
    %41 = vector.broadcast %3 : vector<1x128xf32> to vector<8x128xf32>
    %42 = arith.addf %40, %41 : vector<8x128xf32>
    %43 = vector.extract_strided_slice %42 {offsets = [0, 0], sizes = [8, 32], strides = [1, 1]} : vector<8x128xf32> to vector<8x32xf32>
    %44 = arith.negf %43 : vector<8x32xf32>
    %45 = math.exp %44 : vector<8x32xf32>
    %cst_15 = arith.constant 1.000000e+00 : f32
    %46 = vector.broadcast %cst_15 : f32 to vector<8x32xf32>
    %47 = arith.addf %46, %45 : vector<8x32xf32>
    %48 = arith.divf %46, %47 : vector<8x32xf32>
    %49 = vector.extract_strided_slice %42 {offsets = [0, 32], sizes = [8, 32], strides = [1, 1]} : vector<8x128xf32> to vector<8x32xf32>
    %50 = arith.negf %49 : vector<8x32xf32>
    %51 = math.exp %50 : vector<8x32xf32>
    %cst_16 = arith.constant 1.000000e+00 : f32
    %52 = vector.broadcast %cst_16 : f32 to vector<8x32xf32>
    %53 = arith.addf %52, %51 : vector<8x32xf32>
    %54 = arith.divf %52, %53 : vector<8x32xf32>
    %55 = vector.extract_strided_slice %42 {offsets = [0, 64], sizes = [8, 32], strides = [1, 1]} : vector<8x128xf32> to vector<8x32xf32>
    %56 = math.tanh %55 : vector<8x32xf32>
    %57 = vector.extract_strided_slice %42 {offsets = [0, 96], sizes = [8, 32], strides = [1, 1]} : vector<8x128xf32> to vector<8x32xf32>
    %58 = arith.negf %57 : vector<8x32xf32>
    %59 = math.exp %58 : vector<8x32xf32>
    %cst_17 = arith.constant 1.000000e+00 : f32
    %60 = vector.broadcast %cst_17 : f32 to vector<8x32xf32>
    %61 = arith.addf %60, %59 : vector<8x32xf32>
    %62 = arith.divf %60, %61 : vector<8x32xf32>
    %63 = arith.mulf %54, %4 : vector<8x32xf32>
    %64 = arith.mulf %48, %56 : vector<8x32xf32>
    %65 = arith.addf %63, %64 : vector<8x32xf32>
    %66 = math.tanh %65 : vector<8x32xf32>
    %67 = arith.mulf %62, %66 : vector<8x32xf32>
    %68 = arith.truncf %67 : vector<8x32xf32> to vector<8x32xbf16>
    %69 = arith.index_cast %c0_i32 : i32 to index
    %c0_18 = arith.constant 0 : index
    %c0_19 = arith.constant 0 : index
    %70 = vector.load %arg6[%69, %c0_18, %c0_19] : memref<9x8x32xbf16, #tpu.memory_space<vmem>>, vector<1x8x32xbf16>
    %71 = vector.shape_cast %70 : vector<1x8x32xbf16> to vector<8x32xbf16>
    %72 = vector.shape_cast %68 : vector<8x32xbf16> to vector<1x8x32xbf16>
    tpu.vector_store %arg6[%69, %c0_18, %c0_19], %72 {strides = array<i32>} : memref<9x8x32xbf16, #tpu.memory_space<vmem>>, vector<1x8x32xbf16>,
    %c1_i32 = arith.constant 1 : i32
    %73 = arith.index_cast %c1_i32 : i32 to index
    %c0_20 = arith.constant 0 : index
    %c0_21 = arith.constant 0 : index
    %74 = vector.load %arg1[%73, %c0_20, %c0_21] : memref<9x8x128xf32, #tpu.memory_space<vmem>>, vector<1x8x128xf32>
    %75 = vector.shape_cast %74 : vector<1x8x128xf32> to vector<8x128xf32>
    %76 = arith.truncf %35 : vector<8x32xf32> to vector<8x32xbf16>
    %cst_22 = arith.constant dense<0.000000e+00> : vector<8x128xf32>
    %77 = tpu.matmul %76, %0, %cst_22 {dimension_numbers = #tpu.dot_dimension_numbers<[1], [0], [0], [1], [0, 0, 1, 1], [], []>} : vector<8x32xbf16>, vector<32x128xbf16>, vector<8x128xf32> -> vector<8x128xf32>
    %78 = arith.addf %75, %77 : vector<8x128xf32>
    %79 = vector.extract_strided_slice %78 {offsets = [0, 0], sizes = [8, 32], strides = [1, 1]} : vector<8x128xf32> to vector<8x32xf32>
    %80 = arith.negf %79 : vector<8x32xf32>
    %81 = math.exp %80 : vector<8x32xf32>
    %cst_23 = arith.constant 1.000000e+00 : f32
    %82 = vector.broadcast %cst_23 : f32 to vector<8x32xf32>
    %83 = arith.addf %82, %81 : vector<8x32xf32>
    %84 = arith.divf %82, %83 : vector<8x32xf32>
    %85 = vector.extract_strided_slice %78 {offsets = [0, 32], sizes = [8, 32], strides = [1, 1]} : vector<8x128xf32> to vector<8x32xf32>
    %86 = arith.negf %85 : vector<8x32xf32>
    %87 = math.exp %86 : vector<8x32xf32>
    %cst_24 = arith.constant 1.000000e+00 : f32
    %88 = vector.broadcast %cst_24 : f32 to vector<8x32xf32>
    %89 = arith.addf %88, %87 : vector<8x32xf32>
    %90 = arith.divf %88, %89 : vector<8x32xf32>
    %91 = vector.extract_strided_slice %78 {offsets = [0, 64], sizes = [8, 32], strides = [1, 1]} : vector<8x128xf32> to vector<8x32xf32>
    %92 = math.tanh %91 : vector<8x32xf32>
    %93 = vector.extract_strided_slice %78 {offsets = [0, 96], sizes = [8, 32], strides = [1, 1]} : vector<8x128xf32> to vector<8x32xf32>
    %94 = arith.negf %93 : vector<8x32xf32>
    %95 = math.exp %94 : vector<8x32xf32>
    %cst_25 = arith.constant 1.000000e+00 : f32
    %96 = vector.broadcast %cst_25 : f32 to vector<8x32xf32>
    %97 = arith.addf %96, %95 : vector<8x32xf32>
    %98 = arith.divf %96, %97 : vector<8x32xf32>
    %99 = arith.mulf %90, %33 : vector<8x32xf32>
    %100 = arith.mulf %84, %92 : vector<8x32xf32>
    %101 = arith.addf %99, %100 : vector<8x32xf32>
    %102 = math.tanh %101 : vector<8x32xf32>
    %103 = arith.mulf %98, %102 : vector<8x32xf32>
    %104 = arith.truncf %103 : vector<8x32xf32> to vector<8x32xbf16>
    %cst_26 = arith.constant dense<0.000000e+00> : vector<8x128xf32>
    %105 = tpu.matmul %104, %1, %cst_26 {dimension_numbers = #tpu.dot_dimension_numbers<[1], [0], [0], [1], [0, 0, 1, 1], [], []>} : vector<8x32xbf16>, vector<32x128xbf16>, vector<8x128xf32> -> vector<8x128xf32>
    %106 = arith.truncf %67 : vector<8x32xf32> to vector<8x32xbf16>
    %cst_27 = arith.constant dense<0.000000e+00> : vector<8x128xf32>
    %107 = tpu.matmul %106, %2, %cst_27 {dimension_numbers = #tpu.dot_dimension_numbers<[1], [0], [0], [1], [0, 0, 1, 1], [], []>} : vector<8x32xbf16>, vector<32x128xbf16>, vector<8x128xf32> -> vector<8x128xf32>
    %108 = arith.addf %105, %107 : vector<8x128xf32>
    %109 = vector.broadcast %3 : vector<1x128xf32> to vector<8x128xf32>
    %110 = arith.addf %108, %109 : vector<8x128xf32>
    %111 = vector.extract_strided_slice %110 {offsets = [0, 0], sizes = [8, 32], strides = [1, 1]} : vector<8x128xf32> to vector<8x32xf32>
    %112 = arith.negf %111 : vector<8x32xf32>
    %113 = math.exp %112 : vector<8x32xf32>
    %cst_28 = arith.constant 1.000000e+00 : f32
    %114 = vector.broadcast %cst_28 : f32 to vector<8x32xf32>
    %115 = arith.addf %114, %113 : vector<8x32xf32>
    %116 = arith.divf %114, %115 : vector<8x32xf32>
    %117 = vector.extract_strided_slice %110 {offsets = [0, 32], sizes = [8, 32], strides = [1, 1]} : vector<8x128xf32> to vector<8x32xf32>
    %118 = arith.negf %117 : vector<8x32xf32>
    %119 = math.exp %118 : vector<8x32xf32>
    %cst_29 = arith.constant 1.000000e+00 : f32
    %120 = vector.broadcast %cst_29 : f32 to vector<8x32xf32>
    %121 = arith.addf %120, %119 : vector<8x32xf32>
    %122 = arith.divf %120, %121 : vector<8x32xf32>
    %123 = vector.extract_strided_slice %110 {offsets = [0, 64], sizes = [8, 32], strides = [1, 1]} : vector<8x128xf32> to vector<8x32xf32>
    %124 = math.tanh %123 : vector<8x32xf32>
    %125 = vector.extract_strided_slice %110 {offsets = [0, 96], sizes = [8, 32], strides = [1, 1]} : vector<8x128xf32> to vector<8x32xf32>
    %126 = arith.negf %125 : vector<8x32xf32>
    %127 = math.exp %126 : vector<8x32xf32>
    %cst_30 = arith.constant 1.000000e+00 : f32
    %128 = vector.broadcast %cst_30 : f32 to vector<8x32xf32>
    %129 = arith.addf %128, %127 : vector<8x32xf32>
    %130 = arith.divf %128, %129 : vector<8x32xf32>
    %131 = arith.mulf %122, %65 : vector<8x32xf32>
    %132 = arith.mulf %116, %124 : vector<8x32xf32>
    %133 = arith.addf %131, %132 : vector<8x32xf32>
    %134 = math.tanh %133 : vector<8x32xf32>
    %135 = arith.mulf %130, %134 : vector<8x32xf32>
    %136 = arith.truncf %135 : vector<8x32xf32> to vector<8x32xbf16>
    %137 = arith.index_cast %c1_i32 : i32 to index
    %c0_31 = arith.constant 0 : index
    %c0_32 = arith.constant 0 : index
    %138 = vector.load %arg6[%137, %c0_31, %c0_32] : memref<9x8x32xbf16, #tpu.memory_space<vmem>>, vector<1x8x32xbf16>
    %139 = vector.shape_cast %138 : vector<1x8x32xbf16> to vector<8x32xbf16>
    %140 = vector.shape_cast %136 : vector<8x32xbf16> to vector<1x8x32xbf16>
    tpu.vector_store %arg6[%137, %c0_31, %c0_32], %140 {strides = array<i32>} : memref<9x8x32xbf16, #tpu.memory_space<vmem>>, vector<1x8x32xbf16>,
    %c2_i32 = arith.constant 2 : i32
    %141 = arith.index_cast %c2_i32 : i32 to index
    %c0_33 = arith.constant 0 : index
    %c0_34 = arith.constant 0 : index
    %142 = vector.load %arg1[%141, %c0_33, %c0_34] : memref<9x8x128xf32, #tpu.memory_space<vmem>>, vector<1x8x128xf32>
    %143 = vector.shape_cast %142 : vector<1x8x128xf32> to vector<8x128xf32>
    %144 = arith.truncf %103 : vector<8x32xf32> to vector<8x32xbf16>
    %cst_35 = arith.constant dense<0.000000e+00> : vector<8x128xf32>
    %145 = tpu.matmul %144, %0, %cst_35 {dimension_numbers = #tpu.dot_dimension_numbers<[1], [0], [0], [1], [0, 0, 1, 1], [], []>} : vector<8x32xbf16>, vector<32x128xbf16>, vector<8x128xf32> -> vector<8x128xf32>
    %146 = arith.addf %143, %145 : vector<8x128xf32>
    %147 = vector.extract_strided_slice %146 {offsets = [0, 0], sizes = [8, 32], strides = [1, 1]} : vector<8x128xf32> to vector<8x32xf32>
    %148 = arith.negf %147 : vector<8x32xf32>
    %149 = math.exp %148 : vector<8x32xf32>
    %cst_36 = arith.constant 1.000000e+00 : f32
    %150 = vector.broadcast %cst_36 : f32 to vector<8x32xf32>
    %151 = arith.addf %150, %149 : vector<8x32xf32>
    %152 = arith.divf %150, %151 : vector<8x32xf32>
    %153 = vector.extract_strided_slice %146 {offsets = [0, 32], sizes = [8, 32], strides = [1, 1]} : vector<8x128xf32> to vector<8x32xf32>
    %154 = arith.negf %153 : vector<8x32xf32>
    %155 = math.exp %154 : vector<8x32xf32>
    %cst_37 = arith.constant 1.000000e+00 : f32
    %156 = vector.broadcast %cst_37 : f32 to vector<8x32xf32>
    %157 = arith.addf %156, %155 : vector<8x32xf32>
    %158 = arith.divf %156, %157 : vector<8x32xf32>
    %159 = vector.extract_strided_slice %146 {offsets = [0, 64], sizes = [8, 32], strides = [1, 1]} : vector<8x128xf32> to vector<8x32xf32>
    %160 = math.tanh %159 : vector<8x32xf32>
    %161 = vector.extract_strided_slice %146 {offsets = [0, 96], sizes = [8, 32], strides = [1, 1]} : vector<8x128xf32> to vector<8x32xf32>
    %162 = arith.negf %161 : vector<8x32xf32>
    %163 = math.exp %162 : vector<8x32xf32>
    %cst_38 = arith.constant 1.000000e+00 : f32
    %164 = vector.broadcast %cst_38 : f32 to vector<8x32xf32>
    %165 = arith.addf %164, %163 : vector<8x32xf32>
    %166 = arith.divf %164, %165 : vector<8x32xf32>
    %167 = arith.mulf %158, %101 : vector<8x32xf32>
    %168 = arith.mulf %152, %160 : vector<8x32xf32>
    %169 = arith.addf %167, %168 : vector<8x32xf32>
    %170 = math.tanh %169 : vector<8x32xf32>
    %171 = arith.mulf %166, %170 : vector<8x32xf32>
    %172 = arith.truncf %171 : vector<8x32xf32> to vector<8x32xbf16>
    %cst_39 = arith.constant dense<0.000000e+00> : vector<8x128xf32>
    %173 = tpu.matmul %172, %1, %cst_39 {dimension_numbers = #tpu.dot_dimension_numbers<[1], [0], [0], [1], [0, 0, 1, 1], [], []>} : vector<8x32xbf16>, vector<32x128xbf16>, vector<8x128xf32> -> vector<8x128xf32>
    %174 = arith.truncf %135 : vector<8x32xf32> to vector<8x32xbf16>
    %cst_40 = arith.constant dense<0.000000e+00> : vector<8x128xf32>
    %175 = tpu.matmul %174, %2, %cst_40 {dimension_numbers = #tpu.dot_dimension_numbers<[1], [0], [0], [1], [0, 0, 1, 1], [], []>} : vector<8x32xbf16>, vector<32x128xbf16>, vector<8x128xf32> -> vector<8x128xf32>
    %176 = arith.addf %173, %175 : vector<8x128xf32>
    %177 = vector.broadcast %3 : vector<1x128xf32> to vector<8x128xf32>
    %178 = arith.addf %176, %177 : vector<8x128xf32>
    %179 = vector.extract_strided_slice %178 {offsets = [0, 0], sizes = [8, 32], strides = [1, 1]} : vector<8x128xf32> to vector<8x32xf32>
    %180 = arith.negf %179 : vector<8x32xf32>
    %181 = math.exp %180 : vector<8x32xf32>
    %cst_41 = arith.constant 1.000000e+00 : f32
    %182 = vector.broadcast %cst_41 : f32 to vector<8x32xf32>
    %183 = arith.addf %182, %181 : vector<8x32xf32>
    %184 = arith.divf %182, %183 : vector<8x32xf32>
    %185 = vector.extract_strided_slice %178 {offsets = [0, 32], sizes = [8, 32], strides = [1, 1]} : vector<8x128xf32> to vector<8x32xf32>
    %186 = arith.negf %185 : vector<8x32xf32>
    %187 = math.exp %186 : vector<8x32xf32>
    %cst_42 = arith.constant 1.000000e+00 : f32
    %188 = vector.broadcast %cst_42 : f32 to vector<8x32xf32>
    %189 = arith.addf %188, %187 : vector<8x32xf32>
    %190 = arith.divf %188, %189 : vector<8x32xf32>
    %191 = vector.extract_strided_slice %178 {offsets = [0, 64], sizes = [8, 32], strides = [1, 1]} : vector<8x128xf32> to vector<8x32xf32>
    %192 = math.tanh %191 : vector<8x32xf32>
    %193 = vector.extract_strided_slice %178 {offsets = [0, 96], sizes = [8, 32], strides = [1, 1]} : vector<8x128xf32> to vector<8x32xf32>
    %194 = arith.negf %193 : vector<8x32xf32>
    %195 = math.exp %194 : vector<8x32xf32>
    %cst_43 = arith.constant 1.000000e+00 : f32
    %196 = vector.broadcast %cst_43 : f32 to vector<8x32xf32>
    %197 = arith.addf %196, %195 : vector<8x32xf32>
    %198 = arith.divf %196, %197 : vector<8x32xf32>
    %199 = arith.mulf %190, %133 : vector<8x32xf32>
    %200 = arith.mulf %184, %192 : vector<8x32xf32>
    %201 = arith.addf %199, %200 : vector<8x32xf32>
    %202 = math.tanh %201 : vector<8x32xf32>
    %203 = arith.mulf %198, %202 : vector<8x32xf32>
    %204 = arith.truncf %203 : vector<8x32xf32> to vector<8x32xbf16>
    %205 = arith.index_cast %c2_i32 : i32 to index
    %c0_44 = arith.constant 0 : index
    %c0_45 = arith.constant 0 : index
    %206 = vector.load %arg6[%205, %c0_44, %c0_45] : memref<9x8x32xbf16, #tpu.memory_space<vmem>>, vector<1x8x32xbf16>
    %207 = vector.shape_cast %206 : vector<1x8x32xbf16> to vector<8x32xbf16>
    %208 = vector.shape_cast %204 : vector<8x32xbf16> to vector<1x8x32xbf16>
    tpu.vector_store %arg6[%205, %c0_44, %c0_45], %208 {strides = array<i32>} : memref<9x8x32xbf16, #tpu.memory_space<vmem>>, vector<1x8x32xbf16>,
    %c3_i32 = arith.constant 3 : i32
    %209 = arith.index_cast %c3_i32 : i32 to index
    %c0_46 = arith.constant 0 : index
    %c0_47 = arith.constant 0 : index
    %210 = vector.load %arg1[%209, %c0_46, %c0_47] : memref<9x8x128xf32, #tpu.memory_space<vmem>>, vector<1x8x128xf32>
    %211 = vector.shape_cast %210 : vector<1x8x128xf32> to vector<8x128xf32>
    %212 = arith.truncf %171 : vector<8x32xf32> to vector<8x32xbf16>
    %cst_48 = arith.constant dense<0.000000e+00> : vector<8x128xf32>
    %213 = tpu.matmul %212, %0, %cst_48 {dimension_numbers = #tpu.dot_dimension_numbers<[1], [0], [0], [1], [0, 0, 1, 1], [], []>} : vector<8x32xbf16>, vector<32x128xbf16>, vector<8x128xf32> -> vector<8x128xf32>
    %214 = arith.addf %211, %213 : vector<8x128xf32>
    %215 = vector.extract_strided_slice %214 {offsets = [0, 0], sizes = [8, 32], strides = [1, 1]} : vector<8x128xf32> to vector<8x32xf32>
    %216 = arith.negf %215 : vector<8x32xf32>
    %217 = math.exp %216 : vector<8x32xf32>
    %cst_49 = arith.constant 1.000000e+00 : f32
    %218 = vector.broadcast %cst_49 : f32 to vector<8x32xf32>
    %219 = arith.addf %218, %217 : vector<8x32xf32>
    %220 = arith.divf %218, %219 : vector<8x32xf32>
    %221 = vector.extract_strided_slice %214 {offsets = [0, 32], sizes = [8, 32], strides = [1, 1]} : vector<8x128xf32> to vector<8x32xf32>
    %222 = arith.negf %221 : vector<8x32xf32>
    %223 = math.exp %222 : vector<8x32xf32>
    %cst_50 = arith.constant 1.000000e+00 : f32
    %224 = vector.broadcast %cst_50 : f32 to vector<8x32xf32>
    %225 = arith.addf %224, %223 : vector<8x32xf32>
    %226 = arith.divf %224, %225 : vector<8x32xf32>
    %227 = vector.extract_strided_slice %214 {offsets = [0, 64], sizes = [8, 32], strides = [1, 1]} : vector<8x128xf32> to vector<8x32xf32>
    %228 = math.tanh %227 : vector<8x32xf32>
    %229 = vector.extract_strided_slice %214 {offsets = [0, 96], sizes = [8, 32], strides = [1, 1]} : vector<8x128xf32> to vector<8x32xf32>
    %230 = arith.negf %229 : vector<8x32xf32>
    %231 = math.exp %230 : vector<8x32xf32>
    %cst_51 = arith.constant 1.000000e+00 : f32
    %232 = vector.broadcast %cst_51 : f32 to vector<8x32xf32>
    %233 = arith.addf %232, %231 : vector<8x32xf32>
    %234 = arith.divf %232, %233 : vector<8x32xf32>
    %235 = arith.mulf %226, %169 : vector<8x32xf32>
    %236 = arith.mulf %220, %228 : vector<8x32xf32>
    %237 = arith.addf %235, %236 : vector<8x32xf32>
    %238 = math.tanh %237 : vector<8x32xf32>
    %239 = arith.mulf %234, %238 : vector<8x32xf32>
    %240 = arith.truncf %239 : vector<8x32xf32> to vector<8x32xbf16>
    %cst_52 = arith.constant dense<0.000000e+00> : vector<8x128xf32>
    %241 = tpu.matmul %240, %1, %cst_52 {dimension_numbers = #tpu.dot_dimension_numbers<[1], [0], [0], [1], [0, 0, 1, 1], [], []>} : vector<8x32xbf16>, vector<32x128xbf16>, vector<8x128xf32> -> vector<8x128xf32>
    %242 = arith.truncf %203 : vector<8x32xf32> to vector<8x32xbf16>
    %cst_53 = arith.constant dense<0.000000e+00> : vector<8x128xf32>
    %243 = tpu.matmul %242, %2, %cst_53 {dimension_numbers = #tpu.dot_dimension_numbers<[1], [0], [0], [1], [0, 0, 1, 1], [], []>} : vector<8x32xbf16>, vector<32x128xbf16>, vector<8x128xf32> -> vector<8x128xf32>
    %244 = arith.addf %241, %243 : vector<8x128xf32>
    %245 = vector.broadcast %3 : vector<1x128xf32> to vector<8x128xf32>
    %246 = arith.addf %244, %245 : vector<8x128xf32>
    %247 = vector.extract_strided_slice %246 {offsets = [0, 0], sizes = [8, 32], strides = [1, 1]} : vector<8x128xf32> to vector<8x32xf32>
    %248 = arith.negf %247 : vector<8x32xf32>
    %249 = math.exp %248 : vector<8x32xf32>
    %cst_54 = arith.constant 1.000000e+00 : f32
    %250 = vector.broadcast %cst_54 : f32 to vector<8x32xf32>
    %251 = arith.addf %250, %249 : vector<8x32xf32>
    %252 = arith.divf %250, %251 : vector<8x32xf32>
    %253 = vector.extract_strided_slice %246 {offsets = [0, 32], sizes = [8, 32], strides = [1, 1]} : vector<8x128xf32> to vector<8x32xf32>
    %254 = arith.negf %253 : vector<8x32xf32>
    %255 = math.exp %254 : vector<8x32xf32>
    %cst_55 = arith.constant 1.000000e+00 : f32
    %256 = vector.broadcast %cst_55 : f32 to vector<8x32xf32>
    %257 = arith.addf %256, %255 : vector<8x32xf32>
    %258 = arith.divf %256, %257 : vector<8x32xf32>
    %259 = vector.extract_strided_slice %246 {offsets = [0, 64], sizes = [8, 32], strides = [1, 1]} : vector<8x128xf32> to vector<8x32xf32>
    %260 = math.tanh %259 : vector<8x32xf32>
    %261 = vector.extract_strided_slice %246 {offsets = [0, 96], sizes = [8, 32], strides = [1, 1]} : vector<8x128xf32> to vector<8x32xf32>
    %262 = arith.negf %261 : vector<8x32xf32>
    %263 = math.exp %262 : vector<8x32xf32>
    %cst_56 = arith.constant 1.000000e+00 : f32
    %264 = vector.broadcast %cst_56 : f32 to vector<8x32xf32>
    %265 = arith.addf %264, %263 : vector<8x32xf32>
    %266 = arith.divf %264, %265 : vector<8x32xf32>
    %267 = arith.mulf %258, %201 : vector<8x32xf32>
    %268 = arith.mulf %252, %260 : vector<8x32xf32>
    %269 = arith.addf %267, %268 : vector<8x32xf32>
    %270 = math.tanh %269 : vector<8x32xf32>
    %271 = arith.mulf %266, %270 : vector<8x32xf32>
    %272 = arith.truncf %271 : vector<8x32xf32> to vector<8x32xbf16>
    %273 = arith.index_cast %c3_i32 : i32 to index
    %c0_57 = arith.constant 0 : index
    %c0_58 = arith.constant 0 : index
    %274 = vector.load %arg6[%273, %c0_57, %c0_58] : memref<9x8x32xbf16, #tpu.memory_space<vmem>>, vector<1x8x32xbf16>
    %275 = vector.shape_cast %274 : vector<1x8x32xbf16> to vector<8x32xbf16>
    %276 = vector.shape_cast %272 : vector<8x32xbf16> to vector<1x8x32xbf16>
    tpu.vector_store %arg6[%273, %c0_57, %c0_58], %276 {strides = array<i32>} : memref<9x8x32xbf16, #tpu.memory_space<vmem>>, vector<1x8x32xbf16>,
    %c4_i32 = arith.constant 4 : i32
    %277 = arith.index_cast %c4_i32 : i32 to index
    %c0_59 = arith.constant 0 : index
    %c0_60 = arith.constant 0 : index
    %278 = vector.load %arg1[%277, %c0_59, %c0_60] : memref<9x8x128xf32, #tpu.memory_space<vmem>>, vector<1x8x128xf32>
    %279 = vector.shape_cast %278 : vector<1x8x128xf32> to vector<8x128xf32>
    %280 = arith.truncf %239 : vector<8x32xf32> to vector<8x32xbf16>
    %cst_61 = arith.constant dense<0.000000e+00> : vector<8x128xf32>
    %281 = tpu.matmul %280, %0, %cst_61 {dimension_numbers = #tpu.dot_dimension_numbers<[1], [0], [0], [1], [0, 0, 1, 1], [], []>} : vector<8x32xbf16>, vector<32x128xbf16>, vector<8x128xf32> -> vector<8x128xf32>
    %282 = arith.addf %279, %281 : vector<8x128xf32>
    %283 = vector.extract_strided_slice %282 {offsets = [0, 0], sizes = [8, 32], strides = [1, 1]} : vector<8x128xf32> to vector<8x32xf32>
    %284 = arith.negf %283 : vector<8x32xf32>
    %285 = math.exp %284 : vector<8x32xf32>
    %cst_62 = arith.constant 1.000000e+00 : f32
    %286 = vector.broadcast %cst_62 : f32 to vector<8x32xf32>
    %287 = arith.addf %286, %285 : vector<8x32xf32>
    %288 = arith.divf %286, %287 : vector<8x32xf32>
    %289 = vector.extract_strided_slice %282 {offsets = [0, 32], sizes = [8, 32], strides = [1, 1]} : vector<8x128xf32> to vector<8x32xf32>
    %290 = arith.negf %289 : vector<8x32xf32>
    %291 = math.exp %290 : vector<8x32xf32>
    %cst_63 = arith.constant 1.000000e+00 : f32
    %292 = vector.broadcast %cst_63 : f32 to vector<8x32xf32>
    %293 = arith.addf %292, %291 : vector<8x32xf32>
    %294 = arith.divf %292, %293 : vector<8x32xf32>
    %295 = vector.extract_strided_slice %282 {offsets = [0, 64], sizes = [8, 32], strides = [1, 1]} : vector<8x128xf32> to vector<8x32xf32>
    %296 = math.tanh %295 : vector<8x32xf32>
    %297 = vector.extract_strided_slice %282 {offsets = [0, 96], sizes = [8, 32], strides = [1, 1]} : vector<8x128xf32> to vector<8x32xf32>
    %298 = arith.negf %297 : vector<8x32xf32>
    %299 = math.exp %298 : vector<8x32xf32>
    %cst_64 = arith.constant 1.000000e+00 : f32
    %300 = vector.broadcast %cst_64 : f32 to vector<8x32xf32>
    %301 = arith.addf %300, %299 : vector<8x32xf32>
    %302 = arith.divf %300, %301 : vector<8x32xf32>
    %303 = arith.mulf %294, %237 : vector<8x32xf32>
    %304 = arith.mulf %288, %296 : vector<8x32xf32>
    %305 = arith.addf %303, %304 : vector<8x32xf32>
    %306 = math.tanh %305 : vector<8x32xf32>
    %307 = arith.mulf %302, %306 : vector<8x32xf32>
    %308 = arith.truncf %307 : vector<8x32xf32> to vector<8x32xbf16>
    %cst_65 = arith.constant dense<0.000000e+00> : vector<8x128xf32>
    %309 = tpu.matmul %308, %1, %cst_65 {dimension_numbers = #tpu.dot_dimension_numbers<[1], [0], [0], [1], [0, 0, 1, 1], [], []>} : vector<8x32xbf16>, vector<32x128xbf16>, vector<8x128xf32> -> vector<8x128xf32>
    %310 = arith.truncf %271 : vector<8x32xf32> to vector<8x32xbf16>
    %cst_66 = arith.constant dense<0.000000e+00> : vector<8x128xf32>
    %311 = tpu.matmul %310, %2, %cst_66 {dimension_numbers = #tpu.dot_dimension_numbers<[1], [0], [0], [1], [0, 0, 1, 1], [], []>} : vector<8x32xbf16>, vector<32x128xbf16>, vector<8x128xf32> -> vector<8x128xf32>
    %312 = arith.addf %309, %311 : vector<8x128xf32>
    %313 = vector.broadcast %3 : vector<1x128xf32> to vector<8x128xf32>
    %314 = arith.addf %312, %313 : vector<8x128xf32>
    %315 = vector.extract_strided_slice %314 {offsets = [0, 0], sizes = [8, 32], strides = [1, 1]} : vector<8x128xf32> to vector<8x32xf32>
    %316 = arith.negf %315 : vector<8x32xf32>
    %317 = math.exp %316 : vector<8x32xf32>
    %cst_67 = arith.constant 1.000000e+00 : f32
    %318 = vector.broadcast %cst_67 : f32 to vector<8x32xf32>
    %319 = arith.addf %318, %317 : vector<8x32xf32>
    %320 = arith.divf %318, %319 : vector<8x32xf32>
    %321 = vector.extract_strided_slice %314 {offsets = [0, 32], sizes = [8, 32], strides = [1, 1]} : vector<8x128xf32> to vector<8x32xf32>
    %322 = arith.negf %321 : vector<8x32xf32>
    %323 = math.exp %322 : vector<8x32xf32>
    %cst_68 = arith.constant 1.000000e+00 : f32
    %324 = vector.broadcast %cst_68 : f32 to vector<8x32xf32>
    %325 = arith.addf %324, %323 : vector<8x32xf32>
    %326 = arith.divf %324, %325 : vector<8x32xf32>
    %327 = vector.extract_strided_slice %314 {offsets = [0, 64], sizes = [8, 32], strides = [1, 1]} : vector<8x128xf32> to vector<8x32xf32>
    %328 = math.tanh %327 : vector<8x32xf32>
    %329 = vector.extract_strided_slice %314 {offsets = [0, 96], sizes = [8, 32], strides = [1, 1]} : vector<8x128xf32> to vector<8x32xf32>
    %330 = arith.negf %329 : vector<8x32xf32>
    %331 = math.exp %330 : vector<8x32xf32>
    %cst_69 = arith.constant 1.000000e+00 : f32
    %332 = vector.broadcast %cst_69 : f32 to vector<8x32xf32>
    %333 = arith.addf %332, %331 : vector<8x32xf32>
    %334 = arith.divf %332, %333 : vector<8x32xf32>
    %335 = arith.mulf %326, %269 : vector<8x32xf32>
    %336 = arith.mulf %320, %328 : vector<8x32xf32>
    %337 = arith.addf %335, %336 : vector<8x32xf32>
    %338 = math.tanh %337 : vector<8x32xf32>
    %339 = arith.mulf %334, %338 : vector<8x32xf32>
    %340 = arith.truncf %339 : vector<8x32xf32> to vector<8x32xbf16>
    %341 = arith.index_cast %c4_i32 : i32 to index
    %c0_70 = arith.constant 0 : index
    %c0_71 = arith.constant 0 : index
    %342 = vector.load %arg6[%341, %c0_70, %c0_71] : memref<9x8x32xbf16, #tpu.memory_space<vmem>>, vector<1x8x32xbf16>
    %343 = vector.shape_cast %342 : vector<1x8x32xbf16> to vector<8x32xbf16>
    %344 = vector.shape_cast %340 : vector<8x32xbf16> to vector<1x8x32xbf16>
    tpu.vector_store %arg6[%341, %c0_70, %c0_71], %344 {strides = array<i32>} : memref<9x8x32xbf16, #tpu.memory_space<vmem>>, vector<1x8x32xbf16>,
    %c5_i32 = arith.constant 5 : i32
    %345 = arith.index_cast %c5_i32 : i32 to index
    %c0_72 = arith.constant 0 : index
    %c0_73 = arith.constant 0 : index
    %346 = vector.load %arg1[%345, %c0_72, %c0_73] : memref<9x8x128xf32, #tpu.memory_space<vmem>>, vector<1x8x128xf32>
    %347 = vector.shape_cast %346 : vector<1x8x128xf32> to vector<8x128xf32>
    %348 = arith.truncf %307 : vector<8x32xf32> to vector<8x32xbf16>
    %cst_74 = arith.constant dense<0.000000e+00> : vector<8x128xf32>
    %349 = tpu.matmul %348, %0, %cst_74 {dimension_numbers = #tpu.dot_dimension_numbers<[1], [0], [0], [1], [0, 0, 1, 1], [], []>} : vector<8x32xbf16>, vector<32x128xbf16>, vector<8x128xf32> -> vector<8x128xf32>
    %350 = arith.addf %347, %349 : vector<8x128xf32>
    %351 = vector.extract_strided_slice %350 {offsets = [0, 0], sizes = [8, 32], strides = [1, 1]} : vector<8x128xf32> to vector<8x32xf32>
    %352 = arith.negf %351 : vector<8x32xf32>
    %353 = math.exp %352 : vector<8x32xf32>
    %cst_75 = arith.constant 1.000000e+00 : f32
    %354 = vector.broadcast %cst_75 : f32 to vector<8x32xf32>
    %355 = arith.addf %354, %353 : vector<8x32xf32>
    %356 = arith.divf %354, %355 : vector<8x32xf32>
    %357 = vector.extract_strided_slice %350 {offsets = [0, 32], sizes = [8, 32], strides = [1, 1]} : vector<8x128xf32> to vector<8x32xf32>
    %358 = arith.negf %357 : vector<8x32xf32>
    %359 = math.exp %358 : vector<8x32xf32>
    %cst_76 = arith.constant 1.000000e+00 : f32
    %360 = vector.broadcast %cst_76 : f32 to vector<8x32xf32>
    %361 = arith.addf %360, %359 : vector<8x32xf32>
    %362 = arith.divf %360, %361 : vector<8x32xf32>
    %363 = vector.extract_strided_slice %350 {offsets = [0, 64], sizes = [8, 32], strides = [1, 1]} : vector<8x128xf32> to vector<8x32xf32>
    %364 = math.tanh %363 : vector<8x32xf32>
    %365 = vector.extract_strided_slice %350 {offsets = [0, 96], sizes = [8, 32], strides = [1, 1]} : vector<8x128xf32> to vector<8x32xf32>
    %366 = arith.negf %365 : vector<8x32xf32>
    %367 = math.exp %366 : vector<8x32xf32>
    %cst_77 = arith.constant 1.000000e+00 : f32
    %368 = vector.broadcast %cst_77 : f32 to vector<8x32xf32>
    %369 = arith.addf %368, %367 : vector<8x32xf32>
    %370 = arith.divf %368, %369 : vector<8x32xf32>
    %371 = arith.mulf %362, %305 : vector<8x32xf32>
    %372 = arith.mulf %356, %364 : vector<8x32xf32>
    %373 = arith.addf %371, %372 : vector<8x32xf32>
    %374 = math.tanh %373 : vector<8x32xf32>
    %375 = arith.mulf %370, %374 : vector<8x32xf32>
    %376 = arith.truncf %375 : vector<8x32xf32> to vector<8x32xbf16>
    %cst_78 = arith.constant dense<0.000000e+00> : vector<8x128xf32>
    %377 = tpu.matmul %376, %1, %cst_78 {dimension_numbers = #tpu.dot_dimension_numbers<[1], [0], [0], [1], [0, 0, 1, 1], [], []>} : vector<8x32xbf16>, vector<32x128xbf16>, vector<8x128xf32> -> vector<8x128xf32>
    %378 = arith.truncf %339 : vector<8x32xf32> to vector<8x32xbf16>
    %cst_79 = arith.constant dense<0.000000e+00> : vector<8x128xf32>
    %379 = tpu.matmul %378, %2, %cst_79 {dimension_numbers = #tpu.dot_dimension_numbers<[1], [0], [0], [1], [0, 0, 1, 1], [], []>} : vector<8x32xbf16>, vector<32x128xbf16>, vector<8x128xf32> -> vector<8x128xf32>
    %380 = arith.addf %377, %379 : vector<8x128xf32>
    %381 = vector.broadcast %3 : vector<1x128xf32> to vector<8x128xf32>
    %382 = arith.addf %380, %381 : vector<8x128xf32>
    %383 = vector.extract_strided_slice %382 {offsets = [0, 0], sizes = [8, 32], strides = [1, 1]} : vector<8x128xf32> to vector<8x32xf32>
    %384 = arith.negf %383 : vector<8x32xf32>
    %385 = math.exp %384 : vector<8x32xf32>
    %cst_80 = arith.constant 1.000000e+00 : f32
    %386 = vector.broadcast %cst_80 : f32 to vector<8x32xf32>
    %387 = arith.addf %386, %385 : vector<8x32xf32>
    %388 = arith.divf %386, %387 : vector<8x32xf32>
    %389 = vector.extract_strided_slice %382 {offsets = [0, 32], sizes = [8, 32], strides = [1, 1]} : vector<8x128xf32> to vector<8x32xf32>
    %390 = arith.negf %389 : vector<8x32xf32>
    %391 = math.exp %390 : vector<8x32xf32>
    %cst_81 = arith.constant 1.000000e+00 : f32
    %392 = vector.broadcast %cst_81 : f32 to vector<8x32xf32>
    %393 = arith.addf %392, %391 : vector<8x32xf32>
    %394 = arith.divf %392, %393 : vector<8x32xf32>
    %395 = vector.extract_strided_slice %382 {offsets = [0, 64], sizes = [8, 32], strides = [1, 1]} : vector<8x128xf32> to vector<8x32xf32>
    %396 = math.tanh %395 : vector<8x32xf32>
    %397 = vector.extract_strided_slice %382 {offsets = [0, 96], sizes = [8, 32], strides = [1, 1]} : vector<8x128xf32> to vector<8x32xf32>
    %398 = arith.negf %397 : vector<8x32xf32>
    %399 = math.exp %398 : vector<8x32xf32>
    %cst_82 = arith.constant 1.000000e+00 : f32
    %400 = vector.broadcast %cst_82 : f32 to vector<8x32xf32>
    %401 = arith.addf %400, %399 : vector<8x32xf32>
    %402 = arith.divf %400, %401 : vector<8x32xf32>
    %403 = arith.mulf %394, %337 : vector<8x32xf32>
    %404 = arith.mulf %388, %396 : vector<8x32xf32>
    %405 = arith.addf %403, %404 : vector<8x32xf32>
    %406 = math.tanh %405 : vector<8x32xf32>
    %407 = arith.mulf %402, %406 : vector<8x32xf32>
    %408 = arith.truncf %407 : vector<8x32xf32> to vector<8x32xbf16>
    %409 = arith.index_cast %c5_i32 : i32 to index
    %c0_83 = arith.constant 0 : index
    %c0_84 = arith.constant 0 : index
    %410 = vector.load %arg6[%409, %c0_83, %c0_84] : memref<9x8x32xbf16, #tpu.memory_space<vmem>>, vector<1x8x32xbf16>
    %411 = vector.shape_cast %410 : vector<1x8x32xbf16> to vector<8x32xbf16>
    %412 = vector.shape_cast %408 : vector<8x32xbf16> to vector<1x8x32xbf16>
    tpu.vector_store %arg6[%409, %c0_83, %c0_84], %412 {strides = array<i32>} : memref<9x8x32xbf16, #tpu.memory_space<vmem>>, vector<1x8x32xbf16>,
    %c6_i32 = arith.constant 6 : i32
    %413 = arith.index_cast %c6_i32 : i32 to index
    %c0_85 = arith.constant 0 : index
    %c0_86 = arith.constant 0 : index
    %414 = vector.load %arg1[%413, %c0_85, %c0_86] : memref<9x8x128xf32, #tpu.memory_space<vmem>>, vector<1x8x128xf32>
    %415 = vector.shape_cast %414 : vector<1x8x128xf32> to vector<8x128xf32>
    %416 = arith.truncf %375 : vector<8x32xf32> to vector<8x32xbf16>
    %cst_87 = arith.constant dense<0.000000e+00> : vector<8x128xf32>
    %417 = tpu.matmul %416, %0, %cst_87 {dimension_numbers = #tpu.dot_dimension_numbers<[1], [0], [0], [1], [0, 0, 1, 1], [], []>} : vector<8x32xbf16>, vector<32x128xbf16>, vector<8x128xf32> -> vector<8x128xf32>
    %418 = arith.addf %415, %417 : vector<8x128xf32>
    %419 = vector.extract_strided_slice %418 {offsets = [0, 0], sizes = [8, 32], strides = [1, 1]} : vector<8x128xf32> to vector<8x32xf32>
    %420 = arith.negf %419 : vector<8x32xf32>
    %421 = math.exp %420 : vector<8x32xf32>
    %cst_88 = arith.constant 1.000000e+00 : f32
    %422 = vector.broadcast %cst_88 : f32 to vector<8x32xf32>
    %423 = arith.addf %422, %421 : vector<8x32xf32>
    %424 = arith.divf %422, %423 : vector<8x32xf32>
    %425 = vector.extract_strided_slice %418 {offsets = [0, 32], sizes = [8, 32], strides = [1, 1]} : vector<8x128xf32> to vector<8x32xf32>
    %426 = arith.negf %425 : vector<8x32xf32>
    %427 = math.exp %426 : vector<8x32xf32>
    %cst_89 = arith.constant 1.000000e+00 : f32
    %428 = vector.broadcast %cst_89 : f32 to vector<8x32xf32>
    %429 = arith.addf %428, %427 : vector<8x32xf32>
    %430 = arith.divf %428, %429 : vector<8x32xf32>
    %431 = vector.extract_strided_slice %418 {offsets = [0, 64], sizes = [8, 32], strides = [1, 1]} : vector<8x128xf32> to vector<8x32xf32>
    %432 = math.tanh %431 : vector<8x32xf32>
    %433 = vector.extract_strided_slice %418 {offsets = [0, 96], sizes = [8, 32], strides = [1, 1]} : vector<8x128xf32> to vector<8x32xf32>
    %434 = arith.negf %433 : vector<8x32xf32>
    %435 = math.exp %434 : vector<8x32xf32>
    %cst_90 = arith.constant 1.000000e+00 : f32
    %436 = vector.broadcast %cst_90 : f32 to vector<8x32xf32>
    %437 = arith.addf %436, %435 : vector<8x32xf32>
    %438 = arith.divf %436, %437 : vector<8x32xf32>
    %439 = arith.mulf %430, %373 : vector<8x32xf32>
    %440 = arith.mulf %424, %432 : vector<8x32xf32>
    %441 = arith.addf %439, %440 : vector<8x32xf32>
    %442 = math.tanh %441 : vector<8x32xf32>
    %443 = arith.mulf %438, %442 : vector<8x32xf32>
    %444 = arith.truncf %443 : vector<8x32xf32> to vector<8x32xbf16>
    %cst_91 = arith.constant dense<0.000000e+00> : vector<8x128xf32>
    %445 = tpu.matmul %444, %1, %cst_91 {dimension_numbers = #tpu.dot_dimension_numbers<[1], [0], [0], [1], [0, 0, 1, 1], [], []>} : vector<8x32xbf16>, vector<32x128xbf16>, vector<8x128xf32> -> vector<8x128xf32>
    %446 = arith.truncf %407 : vector<8x32xf32> to vector<8x32xbf16>
    %cst_92 = arith.constant dense<0.000000e+00> : vector<8x128xf32>
    %447 = tpu.matmul %446, %2, %cst_92 {dimension_numbers = #tpu.dot_dimension_numbers<[1], [0], [0], [1], [0, 0, 1, 1], [], []>} : vector<8x32xbf16>, vector<32x128xbf16>, vector<8x128xf32> -> vector<8x128xf32>
    %448 = arith.addf %445, %447 : vector<8x128xf32>
    %449 = vector.broadcast %3 : vector<1x128xf32> to vector<8x128xf32>
    %450 = arith.addf %448, %449 : vector<8x128xf32>
    %451 = vector.extract_strided_slice %450 {offsets = [0, 0], sizes = [8, 32], strides = [1, 1]} : vector<8x128xf32> to vector<8x32xf32>
    %452 = arith.negf %451 : vector<8x32xf32>
    %453 = math.exp %452 : vector<8x32xf32>
    %cst_93 = arith.constant 1.000000e+00 : f32
    %454 = vector.broadcast %cst_93 : f32 to vector<8x32xf32>
    %455 = arith.addf %454, %453 : vector<8x32xf32>
    %456 = arith.divf %454, %455 : vector<8x32xf32>
    %457 = vector.extract_strided_slice %450 {offsets = [0, 32], sizes = [8, 32], strides = [1, 1]} : vector<8x128xf32> to vector<8x32xf32>
    %458 = arith.negf %457 : vector<8x32xf32>
    %459 = math.exp %458 : vector<8x32xf32>
    %cst_94 = arith.constant 1.000000e+00 : f32
    %460 = vector.broadcast %cst_94 : f32 to vector<8x32xf32>
    %461 = arith.addf %460, %459 : vector<8x32xf32>
    %462 = arith.divf %460, %461 : vector<8x32xf32>
    %463 = vector.extract_strided_slice %450 {offsets = [0, 64], sizes = [8, 32], strides = [1, 1]} : vector<8x128xf32> to vector<8x32xf32>
    %464 = math.tanh %463 : vector<8x32xf32>
    %465 = vector.extract_strided_slice %450 {offsets = [0, 96], sizes = [8, 32], strides = [1, 1]} : vector<8x128xf32> to vector<8x32xf32>
    %466 = arith.negf %465 : vector<8x32xf32>
    %467 = math.exp %466 : vector<8x32xf32>
    %cst_95 = arith.constant 1.000000e+00 : f32
    %468 = vector.broadcast %cst_95 : f32 to vector<8x32xf32>
    %469 = arith.addf %468, %467 : vector<8x32xf32>
    %470 = arith.divf %468, %469 : vector<8x32xf32>
    %471 = arith.mulf %462, %405 : vector<8x32xf32>
    %472 = arith.mulf %456, %464 : vector<8x32xf32>
    %473 = arith.addf %471, %472 : vector<8x32xf32>
    %474 = math.tanh %473 : vector<8x32xf32>
    %475 = arith.mulf %470, %474 : vector<8x32xf32>
    %476 = arith.truncf %475 : vector<8x32xf32> to vector<8x32xbf16>
    %477 = arith.index_cast %c6_i32 : i32 to index
    %c0_96 = arith.constant 0 : index
    %c0_97 = arith.constant 0 : index
    %478 = vector.load %arg6[%477, %c0_96, %c0_97] : memref<9x8x32xbf16, #tpu.memory_space<vmem>>, vector<1x8x32xbf16>
    %479 = vector.shape_cast %478 : vector<1x8x32xbf16> to vector<8x32xbf16>
    %480 = vector.shape_cast %476 : vector<8x32xbf16> to vector<1x8x32xbf16>
    tpu.vector_store %arg6[%477, %c0_96, %c0_97], %480 {strides = array<i32>} : memref<9x8x32xbf16, #tpu.memory_space<vmem>>, vector<1x8x32xbf16>,
    %c7_i32 = arith.constant 7 : i32
    %481 = arith.index_cast %c7_i32 : i32 to index
    %c0_98 = arith.constant 0 : index
    %c0_99 = arith.constant 0 : index
    %482 = vector.load %arg1[%481, %c0_98, %c0_99] : memref<9x8x128xf32, #tpu.memory_space<vmem>>, vector<1x8x128xf32>
    %483 = vector.shape_cast %482 : vector<1x8x128xf32> to vector<8x128xf32>
    %484 = arith.truncf %443 : vector<8x32xf32> to vector<8x32xbf16>
    %cst_100 = arith.constant dense<0.000000e+00> : vector<8x128xf32>
    %485 = tpu.matmul %484, %0, %cst_100 {dimension_numbers = #tpu.dot_dimension_numbers<[1], [0], [0], [1], [0, 0, 1, 1], [], []>} : vector<8x32xbf16>, vector<32x128xbf16>, vector<8x128xf32> -> vector<8x128xf32>
    %486 = arith.addf %483, %485 : vector<8x128xf32>
    %487 = vector.extract_strided_slice %486 {offsets = [0, 0], sizes = [8, 32], strides = [1, 1]} : vector<8x128xf32> to vector<8x32xf32>
    %488 = arith.negf %487 : vector<8x32xf32>
    %489 = math.exp %488 : vector<8x32xf32>
    %cst_101 = arith.constant 1.000000e+00 : f32
    %490 = vector.broadcast %cst_101 : f32 to vector<8x32xf32>
    %491 = arith.addf %490, %489 : vector<8x32xf32>
    %492 = arith.divf %490, %491 : vector<8x32xf32>
    %493 = vector.extract_strided_slice %486 {offsets = [0, 32], sizes = [8, 32], strides = [1, 1]} : vector<8x128xf32> to vector<8x32xf32>
    %494 = arith.negf %493 : vector<8x32xf32>
    %495 = math.exp %494 : vector<8x32xf32>
    %cst_102 = arith.constant 1.000000e+00 : f32
    %496 = vector.broadcast %cst_102 : f32 to vector<8x32xf32>
    %497 = arith.addf %496, %495 : vector<8x32xf32>
    %498 = arith.divf %496, %497 : vector<8x32xf32>
    %499 = vector.extract_strided_slice %486 {offsets = [0, 64], sizes = [8, 32], strides = [1, 1]} : vector<8x128xf32> to vector<8x32xf32>
    %500 = math.tanh %499 : vector<8x32xf32>
    %501 = vector.extract_strided_slice %486 {offsets = [0, 96], sizes = [8, 32], strides = [1, 1]} : vector<8x128xf32> to vector<8x32xf32>
    %502 = arith.negf %501 : vector<8x32xf32>
    %503 = math.exp %502 : vector<8x32xf32>
    %cst_103 = arith.constant 1.000000e+00 : f32
    %504 = vector.broadcast %cst_103 : f32 to vector<8x32xf32>
    %505 = arith.addf %504, %503 : vector<8x32xf32>
    %506 = arith.divf %504, %505 : vector<8x32xf32>
    %507 = arith.mulf %498, %441 : vector<8x32xf32>
    %508 = arith.mulf %492, %500 : vector<8x32xf32>
    %509 = arith.addf %507, %508 : vector<8x32xf32>
    %510 = math.tanh %509 : vector<8x32xf32>
    %511 = arith.mulf %506, %510 : vector<8x32xf32>
    %512 = arith.truncf %511 : vector<8x32xf32> to vector<8x32xbf16>
    %cst_104 = arith.constant dense<0.000000e+00> : vector<8x128xf32>
    %513 = tpu.matmul %512, %1, %cst_104 {dimension_numbers = #tpu.dot_dimension_numbers<[1], [0], [0], [1], [0, 0, 1, 1], [], []>} : vector<8x32xbf16>, vector<32x128xbf16>, vector<8x128xf32> -> vector<8x128xf32>
    %514 = arith.truncf %475 : vector<8x32xf32> to vector<8x32xbf16>
    %cst_105 = arith.constant dense<0.000000e+00> : vector<8x128xf32>
    %515 = tpu.matmul %514, %2, %cst_105 {dimension_numbers = #tpu.dot_dimension_numbers<[1], [0], [0], [1], [0, 0, 1, 1], [], []>} : vector<8x32xbf16>, vector<32x128xbf16>, vector<8x128xf32> -> vector<8x128xf32>
    %516 = arith.addf %513, %515 : vector<8x128xf32>
    %517 = vector.broadcast %3 : vector<1x128xf32> to vector<8x128xf32>
    %518 = arith.addf %516, %517 : vector<8x128xf32>
    %519 = vector.extract_strided_slice %518 {offsets = [0, 0], sizes = [8, 32], strides = [1, 1]} : vector<8x128xf32> to vector<8x32xf32>
    %520 = arith.negf %519 : vector<8x32xf32>
    %521 = math.exp %520 : vector<8x32xf32>
    %cst_106 = arith.constant 1.000000e+00 : f32
    %522 = vector.broadcast %cst_106 : f32 to vector<8x32xf32>
    %523 = arith.addf %522, %521 : vector<8x32xf32>
    %524 = arith.divf %522, %523 : vector<8x32xf32>
    %525 = vector.extract_strided_slice %518 {offsets = [0, 32], sizes = [8, 32], strides = [1, 1]} : vector<8x128xf32> to vector<8x32xf32>
    %526 = arith.negf %525 : vector<8x32xf32>
    %527 = math.exp %526 : vector<8x32xf32>
    %cst_107 = arith.constant 1.000000e+00 : f32
    %528 = vector.broadcast %cst_107 : f32 to vector<8x32xf32>
    %529 = arith.addf %528, %527 : vector<8x32xf32>
    %530 = arith.divf %528, %529 : vector<8x32xf32>
    %531 = vector.extract_strided_slice %518 {offsets = [0, 64], sizes = [8, 32], strides = [1, 1]} : vector<8x128xf32> to vector<8x32xf32>
    %532 = math.tanh %531 : vector<8x32xf32>
    %533 = vector.extract_strided_slice %518 {offsets = [0, 96], sizes = [8, 32], strides = [1, 1]} : vector<8x128xf32> to vector<8x32xf32>
    %534 = arith.negf %533 : vector<8x32xf32>
    %535 = math.exp %534 : vector<8x32xf32>
    %cst_108 = arith.constant 1.000000e+00 : f32
    %536 = vector.broadcast %cst_108 : f32 to vector<8x32xf32>
    %537 = arith.addf %536, %535 : vector<8x32xf32>
    %538 = arith.divf %536, %537 : vector<8x32xf32>
    %539 = arith.mulf %530, %473 : vector<8x32xf32>
    %540 = arith.mulf %524, %532 : vector<8x32xf32>
    %541 = arith.addf %539, %540 : vector<8x32xf32>
    %542 = math.tanh %541 : vector<8x32xf32>
    %543 = arith.mulf %538, %542 : vector<8x32xf32>
    %544 = arith.truncf %543 : vector<8x32xf32> to vector<8x32xbf16>
    %545 = arith.index_cast %c7_i32 : i32 to index
    %c0_109 = arith.constant 0 : index
    %c0_110 = arith.constant 0 : index
    %546 = vector.load %arg6[%545, %c0_109, %c0_110] : memref<9x8x32xbf16, #tpu.memory_space<vmem>>, vector<1x8x32xbf16>
    %547 = vector.shape_cast %546 : vector<1x8x32xbf16> to vector<8x32xbf16>
    %548 = vector.shape_cast %544 : vector<8x32xbf16> to vector<1x8x32xbf16>
    tpu.vector_store %arg6[%545, %c0_109, %c0_110], %548 {strides = array<i32>} : memref<9x8x32xbf16, #tpu.memory_space<vmem>>, vector<1x8x32xbf16>,
    %c8_i32 = arith.constant 8 : i32
    %549 = arith.index_cast %c8_i32 : i32 to index
    %c0_111 = arith.constant 0 : index
    %c0_112 = arith.constant 0 : index
    %550 = vector.load %arg1[%549, %c0_111, %c0_112] : memref<9x8x128xf32, #tpu.memory_space<vmem>>, vector<1x8x128xf32>
    %551 = vector.shape_cast %550 : vector<1x8x128xf32> to vector<8x128xf32>
    %552 = arith.truncf %511 : vector<8x32xf32> to vector<8x32xbf16>
    %cst_113 = arith.constant dense<0.000000e+00> : vector<8x128xf32>
    %553 = tpu.matmul %552, %0, %cst_113 {dimension_numbers = #tpu.dot_dimension_numbers<[1], [0], [0], [1], [0, 0, 1, 1], [], []>} : vector<8x32xbf16>, vector<32x128xbf16>, vector<8x128xf32> -> vector<8x128xf32>
    %554 = arith.addf %551, %553 : vector<8x128xf32>
    %555 = vector.extract_strided_slice %554 {offsets = [0, 0], sizes = [8, 32], strides = [1, 1]} : vector<8x128xf32> to vector<8x32xf32>
    %556 = arith.negf %555 : vector<8x32xf32>
    %557 = math.exp %556 : vector<8x32xf32>
    %cst_114 = arith.constant 1.000000e+00 : f32
    %558 = vector.broadcast %cst_114 : f32 to vector<8x32xf32>
    %559 = arith.addf %558, %557 : vector<8x32xf32>
    %560 = arith.divf %558, %559 : vector<8x32xf32>
    %561 = vector.extract_strided_slice %554 {offsets = [0, 32], sizes = [8, 32], strides = [1, 1]} : vector<8x128xf32> to vector<8x32xf32>
    %562 = arith.negf %561 : vector<8x32xf32>
    %563 = math.exp %562 : vector<8x32xf32>
    %cst_115 = arith.constant 1.000000e+00 : f32
    %564 = vector.broadcast %cst_115 : f32 to vector<8x32xf32>
    %565 = arith.addf %564, %563 : vector<8x32xf32>
    %566 = arith.divf %564, %565 : vector<8x32xf32>
    %567 = vector.extract_strided_slice %554 {offsets = [0, 64], sizes = [8, 32], strides = [1, 1]} : vector<8x128xf32> to vector<8x32xf32>
    %568 = math.tanh %567 : vector<8x32xf32>
    %569 = vector.extract_strided_slice %554 {offsets = [0, 96], sizes = [8, 32], strides = [1, 1]} : vector<8x128xf32> to vector<8x32xf32>
    %570 = arith.negf %569 : vector<8x32xf32>
    %571 = math.exp %570 : vector<8x32xf32>
    %cst_116 = arith.constant 1.000000e+00 : f32
    %572 = vector.broadcast %cst_116 : f32 to vector<8x32xf32>
    %573 = arith.addf %572, %571 : vector<8x32xf32>
    %574 = arith.divf %572, %573 : vector<8x32xf32>
    %575 = arith.mulf %566, %509 : vector<8x32xf32>
    %576 = arith.mulf %560, %568 : vector<8x32xf32>
    %577 = arith.addf %575, %576 : vector<8x32xf32>
    %578 = math.tanh %577 : vector<8x32xf32>
    %579 = arith.mulf %574, %578 : vector<8x32xf32>
    %580 = arith.truncf %579 : vector<8x32xf32> to vector<8x32xbf16>
    %cst_117 = arith.constant dense<0.000000e+00> : vector<8x128xf32>
    %581 = tpu.matmul %580, %1, %cst_117 {dimension_numbers = #tpu.dot_dimension_numbers<[1], [0], [0], [1], [0, 0, 1, 1], [], []>} : vector<8x32xbf16>, vector<32x128xbf16>, vector<8x128xf32> -> vector<8x128xf32>
    %582 = arith.truncf %543 : vector<8x32xf32> to vector<8x32xbf16>
    %cst_118 = arith.constant dense<0.000000e+00> : vector<8x128xf32>
    %583 = tpu.matmul %582, %2, %cst_118 {dimension_numbers = #tpu.dot_dimension_numbers<[1], [0], [0], [1], [0, 0, 1, 1], [], []>} : vector<8x32xbf16>, vector<32x128xbf16>, vector<8x128xf32> -> vector<8x128xf32>
    %584 = arith.addf %581, %583 : vector<8x128xf32>
    %585 = vector.broadcast %3 : vector<1x128xf32> to vector<8x128xf32>
    %586 = arith.addf %584, %585 : vector<8x128xf32>
    %587 = vector.extract_strided_slice %586 {offsets = [0, 0], sizes = [8, 32], strides = [1, 1]} : vector<8x128xf32> to vector<8x32xf32>
    %588 = arith.negf %587 : vector<8x32xf32>
    %589 = math.exp %588 : vector<8x32xf32>
    %cst_119 = arith.constant 1.000000e+00 : f32
    %590 = vector.broadcast %cst_119 : f32 to vector<8x32xf32>
    %591 = arith.addf %590, %589 : vector<8x32xf32>
    %592 = arith.divf %590, %591 : vector<8x32xf32>
    %593 = vector.extract_strided_slice %586 {offsets = [0, 32], sizes = [8, 32], strides = [1, 1]} : vector<8x128xf32> to vector<8x32xf32>
    %594 = arith.negf %593 : vector<8x32xf32>
    %595 = math.exp %594 : vector<8x32xf32>
    %cst_120 = arith.constant 1.000000e+00 : f32
    %596 = vector.broadcast %cst_120 : f32 to vector<8x32xf32>
    %597 = arith.addf %596, %595 : vector<8x32xf32>
    %598 = arith.divf %596, %597 : vector<8x32xf32>
    %599 = vector.extract_strided_slice %586 {offsets = [0, 64], sizes = [8, 32], strides = [1, 1]} : vector<8x128xf32> to vector<8x32xf32>
    %600 = math.tanh %599 : vector<8x32xf32>
    %601 = vector.extract_strided_slice %586 {offsets = [0, 96], sizes = [8, 32], strides = [1, 1]} : vector<8x128xf32> to vector<8x32xf32>
    %602 = arith.negf %601 : vector<8x32xf32>
    %603 = math.exp %602 : vector<8x32xf32>
    %cst_121 = arith.constant 1.000000e+00 : f32
    %604 = vector.broadcast %cst_121 : f32 to vector<8x32xf32>
    %605 = arith.addf %604, %603 : vector<8x32xf32>
    %606 = arith.divf %604, %605 : vector<8x32xf32>
    %607 = arith.mulf %598, %541 : vector<8x32xf32>
    %608 = arith.mulf %592, %600 : vector<8x32xf32>
    %609 = arith.addf %607, %608 : vector<8x32xf32>
    %610 = math.tanh %609 : vector<8x32xf32>
    %611 = arith.mulf %606, %610 : vector<8x32xf32>
    %612 = arith.truncf %611 : vector<8x32xf32> to vector<8x32xbf16>
    %613 = arith.index_cast %c8_i32 : i32 to index
    %c0_122 = arith.constant 0 : index
    %c0_123 = arith.constant 0 : index
    %614 = vector.load %arg6[%613, %c0_122, %c0_123] : memref<9x8x32xbf16, #tpu.memory_space<vmem>>, vector<1x8x32xbf16>
    %615 = vector.shape_cast %614 : vector<1x8x32xbf16> to vector<8x32xbf16>
    %616 = vector.shape_cast %612 : vector<8x32xbf16> to vector<1x8x32xbf16>
    tpu.vector_store %arg6[%613, %c0_122, %c0_123], %616 {strides = array<i32>} : memref<9x8x32xbf16, #tpu.memory_space<vmem>>, vector<1x8x32xbf16>,
    %c9_i32 = arith.constant 9 : i32
    return
  }
  func.func @transform_0(%arg0: i32) -> (i32, i32, i32) {
    %c0_i32 = arith.constant 0 : i32
    %c0_i32_0 = arith.constant 0 : i32
    %c0_i32_1 = arith.constant 0 : i32
    %c0_i32_2 = arith.constant 0 : i32
    return %c0_i32, %c0_i32_0, %c0_i32_1 : i32, i32, i32
  }
  func.func @transform_1(%arg0: i32) -> (i32, i32) {
    %c0_i32 = arith.constant 0 : i32
    %c0_i32_0 = arith.constant 0 : i32
    %c0_i32_1 = arith.constant 0 : i32
    return %c0_i32, %c0_i32_0 : i32, i32
  }
  func.func @transform_2(%arg0: i32) -> (i32, i32) {
    %c0_i32 = arith.constant 0 : i32
    %c0_i32_0 = arith.constant 0 : i32
    %c0_i32_1 = arith.constant 0 : i32
    return %c0_i32, %c0_i32_0 : i32, i32
  }
  func.func @transform_3(%arg0: i32) -> (i32, i32) {
    %c0_i32 = arith.constant 0 : i32
    %c0_i32_0 = arith.constant 0 : i32
    %c0_i32_1 = arith.constant 0 : i32
    return %c0_i32, %c0_i32_0 : i32, i32
  }
  func.func @transform_4(%arg0: i32) -> (i32, i32) {
    %c0_i32 = arith.constant 0 : i32
    %c0_i32_0 = arith.constant 0 : i32
    %c0_i32_1 = arith.constant 0 : i32
    return %c0_i32, %c0_i32_0 : i32, i32
  }
  func.func @transform_5(%arg0: i32) -> (i32, i32, i32) {
    %c0_i32 = arith.constant 0 : i32
    %c0_i32_0 = arith.constant 0 : i32
    %c0_i32_1 = arith.constant 0 : i32
    %c0_i32_2 = arith.constant 0 : i32
    return %c0_i32, %c0_i32_0, %c0_i32_1 : i32, i32, i32
  }
}

</mosaic_0001>

<bundles_post_ra>
// kernel: decoder_forward.5
= control target key start
LH: loop header
LB: loop body
LE: loop exit
PB: predicated region body
PF: predicated region fallthrough
CT: control target
= control target key end

     0   :  { %v228_v0 = vmov 0.0   ;;  %vm229_vm0 = vmmov 0   ;;  %vm70_vm1 = vcmask 261120   ;;  %s306_s1 = inlined_call_operand.vmem [shape: bf16[32,128], index: 1, kind: input, shape index: {}]   ;;  %s307_s0 = inlined_call_operand.vmem [shape: bf16[72,32], index: 0, kind: input, shape index: {}]   ;;  %s308_s2 = inlined_call_operand.vmem [shape: f32[1,128], index: 2, kind: input, shape index: {}]   ;;  %s309_s3 = inlined_call_operand.vmem [shape: f32[72,128], index: 3, kind: output, shape index: {}]  }
   0x1   :  { %191 = vmatprep.subr.bf16.mxu0 %v228_v0  ;;  %v221_v1 = vld [vmem:[%s306_s1] sm:$0xff]   ;;  %215 = vmatprep.subr.bf16.mxu1 %v228_v0  ;;  %v222_v2 = vld [vmem:[%s306_s1 + $0x8] sm:$0xff]   ;;  %v224_v4 = vld [vmem:[%s307_s0 + $0x18] sm:$0xff]  }
   0x2   :  { %195 = vmatprep.mubr.msk.bf16.mxu0 %vm229_vm0, %v228_v0  ;;  %207 = vmatprep.mubr.msk.bf16.mxu1 %vm229_vm0, %v228_v0  ;;  %v223_v3 = vld [vmem:[%s307_s0] sm:$0xff]   ;;  %v225_v5 = vld [vmem:[%s307_s0 + $0x8] sm:$0xff]   ;;  %v227_v7 = vld [vmem:[%s307_s0 + $0x10] sm:$0xff]  }
   0x3   :  { %192 = vmatpush3.bf16.msra.mxu0 %v221_v1  ;;  %217 = vmatpush3.bf16.msra.mxu1 %v221_v1  ;;  %v226_v6 = vld [vmem:[%s307_s0 + $0x20] ss:$0 sps:$4 sm:$0xff]  }
   0x4   :  { %193 = vmatprep.subr.bf16.mxu0 %v228_v0  ;;  %216 = vmatprep.subr.bf16.mxu1 %v228_v0  ;;  %v171_v8 = vld [vmem:[%s308_s2] ss:$0 sm:$0xff] }
   0x7   :  { %194 = vmatpush3.bf16.msra.mxu0 %v222_v2  ;;  %218 = vmatpush3.bf16.msra.mxu1 %v222_v2 }
   0xa   :  { %196 = vmatmul.mubr.msk.bf16.vlgmr.msra.gmra.mrb[0].mxu0 %vm70_vm1, %v223_v3  ;;  %208 = vmatmul.mubr.msk.bf16.vlgmr.msra.gmra.mrb[0].mxu1 %vm70_vm1, %v224_v4 }
   0xb   :  { %199 = vmatprep.mubr.msk.bf16.mxu0 %vm229_vm0, %v228_v0  ;;  %211 = vmatprep.mubr.msk.bf16.mxu1 %vm229_vm0, %v228_v0 }
  0x12   :  { %200 = vmatmul.mubr.msk.bf16.gmra.mrb[4].mxu0 %vm70_vm1, %v225_v5  ;;  %212 = vmatmul.mubr.msk.bf16.gmra.mrb[4].mxu1 %vm70_vm1, %v226_v6 }
  0x13   :  { %203 = vmatprep.mubr.msk.bf16.mxu0 %vm229_vm0, %v228_v0 }
  0x1a   :  { %204 = vmatmul.mubr.msk.bf16.gmra.mrb[8].mxu0 %vm70_vm1, %v227_v7 }
  0xdd   :  { %v120_v9 = vpop.f32.mrb[0].mxu0  ;;  %v144_v10 = vpop.f32.mrb[0].mxu1 }
  0xde   :  { %v121_v11 = vadd.f32 %v171_v8, %v120_v9  ;;  %v197_v12 = vpop.f32.mrb[1].mxu0  ;;  %v145_v13 = vadd.f32 %v171_v8, %v144_v10  ;;  %v209_v14 = vpop.f32.mrb[1].mxu1 }
  0xdf   :  { %v123_v15 = vpop.f32.mrb[2].mxu0  ;;  %v147_v16 = vpop.f32.mrb[2].mxu1 }
  0xe0   :  { %158 = vst [vmem:[%s309_s3] sm:$0xff] %v121_v11  ;;  %v124_v17 = vadd.f32 %v171_v8, %v123_v15  ;;  %v198_v18 = vpop.f32.mrb[3].mxu0  ;;  %164 = vst [vmem:[%s309_s3 + $0x30] sm:$0xff] %v145_v13  ;;  %v148_v19 = vadd.f32 %v171_v8, %v147_v16  ;;  %v210_v20 = vpop.f32.mrb[3].mxu1 }
  0xe2   :  { %159 = vst [vmem:[%s309_s3 + $0x8] sm:$0xff] %v124_v17  ;;  %165 = vst [vmem:[%s309_s3 + $0x38] sm:$0xff] %v148_v19 }
  0xe5   :  { %v128_v21 = vpop.f32.mrb[4].mxu0  ;;  %v152_v22 = vpop.f32.mrb[4].mxu1 }
  0xe6   :  { %v129_v23 = vadd.f32 %v171_v8, %v128_v21  ;;  %v201_v24 = vpop.f32.mrb[5].mxu0  ;;  %v153_v25 = vadd.f32 %v171_v8, %v152_v22  ;;  %v213_v26 = vpop.f32.mrb[5].mxu1 }
  0xe7   :  { %v131_v27 = vpop.f32.mrb[6].mxu0  ;;  %v155_v28 = vpop.f32.mrb[6].mxu1 }
  0xe8   :  { %160 = vst [vmem:[%s309_s3 + $0x10] sm:$0xff] %v129_v23  ;;  %v132_v29 = vadd.f32 %v171_v8, %v131_v27  ;;  %v202_v30 = vpop.f32.mrb[7].mxu0  ;;  %166 = vst [vmem:[%s309_s3 + $0x40] sm:$0xff] %v153_v25  ;;  %v214_v31 = vpop.f32.mrb[7].mxu1 }
  0xea   :  { %161 = vst [vmem:[%s309_s3 + $0x18] sm:$0xff] %v132_v29 }
  0xed   :  { %v136_v32 = vpop.f32.mrb[8].mxu0 }
  0xee   :  { %v137_v33 = vadd.f32 %v171_v8, %v136_v32  ;;  %v205_v34 = vpop.f32.mrb[9].mxu0 }
  0xef   :  { %v139_v35 = vpop.f32.mrb[10].mxu0 }
  0xf0   :  { %162 = vst [vmem:[%s309_s3 + $0x20] sm:$0xff] %v137_v33  ;;  %v140_v36 = vadd.f32 %v171_v8, %v139_v35  ;;  %v206_v37 = vpop.f32.mrb[11].mxu0 }
  0xf2   :  { %163 = vst [vmem:[%s309_s3 + $0x28] sm:$0xff] %v140_v36 }

// kernel: decoder_forward.3
= control target key start
LH: loop header
LB: loop body
LE: loop exit
PB: predicated region body
PF: predicated region fallthrough
CT: control target
= control target key end

     0   :  { %v228_v0 = vmov 0.0   ;;  %vm229_vm0 = vmmov 0   ;;  %vm70_vm1 = vcmask 261120   ;;  %s306_s1 = inlined_call_operand.vmem [shape: bf16[32,128], index: 1, kind: input, shape index: {}]   ;;  %s307_s0 = inlined_call_operand.vmem [shape: bf16[72,32], index: 0, kind: input, shape index: {}]   ;;  %s308_s2 = inlined_call_operand.vmem [shape: f32[1,128], index: 2, kind: input, shape index: {}]   ;;  %s309_s3 = inlined_call_operand.vmem [shape: f32[72,128], index: 3, kind: output, shape index: {}]  }
   0x1   :  { %191 = vmatprep.subr.bf16.mxu0 %v228_v0  ;;  %v221_v1 = vld [vmem:[%s306_s1] sm:$0xff]   ;;  %215 = vmatprep.subr.bf16.mxu1 %v228_v0  ;;  %v222_v2 = vld [vmem:[%s306_s1 + $0x8] sm:$0xff]   ;;  %v224_v4 = vld [vmem:[%s307_s0 + $0x18] sm:$0xff]  }
   0x2   :  { %195 = vmatprep.mubr.msk.bf16.mxu0 %vm229_vm0, %v228_v0  ;;  %207 = vmatprep.mubr.msk.bf16.mxu1 %vm229_vm0, %v228_v0  ;;  %v223_v3 = vld [vmem:[%s307_s0] sm:$0xff]   ;;  %v225_v5 = vld [vmem:[%s307_s0 + $0x8] sm:$0xff]   ;;  %v227_v7 = vld [vmem:[%s307_s0 + $0x10] sm:$0xff]  }
   0x3   :  { %192 = vmatpush3.bf16.msra.mxu0 %v221_v1  ;;  %217 = vmatpush3.bf16.msra.mxu1 %v221_v1  ;;  %v226_v6 = vld [vmem:[%s307_s0 + $0x20] ss:$0 sps:$4 sm:$0xff]  }
   0x4   :  { %193 = vmatprep.subr.bf16.mxu0 %v228_v0  ;;  %216 = vmatprep.subr.bf16.mxu1 %v228_v0  ;;  %v171_v8 = vld [vmem:[%s308_s2] ss:$0 sm:$0xff] }
   0x7   :  { %194 = vmatpush3.bf16.msra.mxu0 %v222_v2  ;;  %218 = vmatpush3.bf16.msra.mxu1 %v222_v2 }
   0xa   :  { %196 = vmatmul.mubr.msk.bf16.vlgmr.msra.gmra.mrb[0].mxu0 %vm70_vm1, %v223_v3  ;;  %208 = vmatmul.mubr.msk.bf16.vlgmr.msra.gmra.mrb[0].mxu1 %vm70_vm1, %v224_v4 }
   0xb   :  { %199 = vmatprep.mubr.msk.bf16.mxu0 %vm229_vm0, %v228_v0  ;;  %211 = vmatprep.mubr.msk.bf16.mxu1 %vm229_vm0, %v228_v0 }
  0x12   :  { %200 = vmatmul.mubr.msk.bf16.gmra.mrb[4].mxu0 %vm70_vm1, %v225_v5  ;;  %212 = vmatmul.mubr.msk.bf16.gmra.mrb[4].mxu1 %vm70_vm1, %v226_v6 }
  0x13   :  { %203 = vmatprep.mubr.msk.bf16.mxu0 %vm229_vm0, %v228_v0 }
  0x1a   :  { %204 = vmatmul.mubr.msk.bf16.gmra.mrb[8].mxu0 %vm70_vm1, %v227_v7 }
  0xdd   :  { %v120_v9 = vpop.f32.mrb[0].mxu0  ;;  %v144_v10 = vpop.f32.mrb[0].mxu1 }
  0xde   :  { %v121_v11 = vadd.f32 %v171_v8, %v120_v9  ;;  %v197_v12 = vpop.f32.mrb[1].mxu0  ;;  %v145_v13 = vadd.f32 %v171_v8, %v144_v10  ;;  %v209_v14 = vpop.f32.mrb[1].mxu1 }
  0xdf   :  { %v123_v15 = vpop.f32.mrb[2].mxu0  ;;  %v147_v16 = vpop.f32.mrb[2].mxu1 }
  0xe0   :  { %158 = vst [vmem:[%s309_s3] sm:$0xff] %v121_v11  ;;  %v124_v17 = vadd.f32 %v171_v8, %v123_v15  ;;  %v198_v18 = vpop.f32.mrb[3].mxu0  ;;  %164 = vst [vmem:[%s309_s3 + $0x30] sm:$0xff] %v145_v13  ;;  %v148_v19 = vadd.f32 %v171_v8, %v147_v16  ;;  %v210_v20 = vpop.f32.mrb[3].mxu1 }
  0xe2   :  { %159 = vst [vmem:[%s309_s3 + $0x8] sm:$0xff] %v124_v17  ;;  %165 = vst [vmem:[%s309_s3 + $0x38] sm:$0xff] %v148_v19 }
  0xe5   :  { %v128_v21 = vpop.f32.mrb[4].mxu0  ;;  %v152_v22 = vpop.f32.mrb[4].mxu1 }
  0xe6   :  { %v129_v23 = vadd.f32 %v171_v8, %v128_v21  ;;  %v201_v24 = vpop.f32.mrb[5].mxu0  ;;  %v153_v25 = vadd.f32 %v171_v8, %v152_v22  ;;  %v213_v26 = vpop.f32.mrb[5].mxu1 }
  0xe7   :  { %v131_v27 = vpop.f32.mrb[6].mxu0  ;;  %v155_v28 = vpop.f32.mrb[6].mxu1 }
  0xe8   :  { %160 = vst [vmem:[%s309_s3 + $0x10] sm:$0xff] %v129_v23  ;;  %v132_v29 = vadd.f32 %v171_v8, %v131_v27  ;;  %v202_v30 = vpop.f32.mrb[7].mxu0  ;;  %166 = vst [vmem:[%s309_s3 + $0x40] sm:$0xff] %v153_v25  ;;  %v214_v31 = vpop.f32.mrb[7].mxu1 }
  0xea   :  { %161 = vst [vmem:[%s309_s3 + $0x18] sm:$0xff] %v132_v29 }
  0xed   :  { %v136_v32 = vpop.f32.mrb[8].mxu0 }
  0xee   :  { %v137_v33 = vadd.f32 %v171_v8, %v136_v32  ;;  %v205_v34 = vpop.f32.mrb[9].mxu0 }
  0xef   :  { %v139_v35 = vpop.f32.mrb[10].mxu0 }
  0xf0   :  { %162 = vst [vmem:[%s309_s3 + $0x20] sm:$0xff] %v137_v33  ;;  %v140_v36 = vadd.f32 %v171_v8, %v139_v35  ;;  %v206_v37 = vpop.f32.mrb[11].mxu0 }
  0xf2   :  { %163 = vst [vmem:[%s309_s3 + $0x28] sm:$0xff] %v140_v36 }

// kernel: decoder_forward.4
= control target key start
LH: loop header
LB: loop body
LE: loop exit
PB: predicated region body
PF: predicated region fallthrough
CT: control target
= control target key end

     0   :  { %v2358_v0 = vmov 0.0   ;;  %vm2359_vm0 = vmmov 0   ;;  %v2360_v3 = vmov 0   ;;  %s2361_s24 = smov 64   ;;  %s2362_s25 = smov 32   ;;  %vm47_vm1 = vcmask 261120   ;;  %s2890_s1 = inlined_call_operand.vmem [shape: bf16[32,128], index: 1, kind: input, shape index: {}]   ;;  %s2891_s0 = inlined_call_operand.vmem [shape: f32[9,8,128], index: 0, kind: input, shape index: {}]   ;;  %s2892_s3 = inlined_call_operand.vmem [shape: bf16[32,128], index: 3, kind: input, shape index: {}]   ;;  %s2893_s2 = inlined_call_operand.vmem [shape: bf16[32,128], index: 2, kind: input, shape index: {}]   ;;  %s2894_s4 = inlined_call_operand.vmem [shape: f32[1,128], index: 4, kind: input, shape index: {}]   ;;  %s2895_s5 = inlined_call_operand.vmem [shape: bf16[9,8,32], index: 5, kind: output, shape index: {}]  }
   0x1   :  { %1980 = vmatprep.subr.bf16.mxu0 %v2358_v0  ;;  %v2397_v1 = vld [vmem:[%s2890_s1] sm:$0xff]   ;;  %1984 = vmatprep.mubr.msk.bf16.mxu0 %vm2359_vm0, %v2358_v0  ;;  %v2408_v2 = vld [vmem:[%s2890_s1 + $0x8] sm:$0xff]   ;;  %vm265_vm2 = vcmask 257024  }
   0x2   :  { %1988 = vmatprep.subr.bf16.mxu1 %v2358_v0  ;;  %1992 = vmatprep.mubr.msk.bf16.mxu1 %vm2359_vm0, %v2358_v0  ;;  %v34_v4 = vld [vmem:[%s2891_s0] sm:$0xff]  ;;  %v2431_v21 = vld [vmem:[%s2892_s3 + $0x8] sm:$0xff]  }
   0x3   :  { %1981 = vmatpush3.bf16.msra.mxu0 %v2397_v1  ;;  %v2426_v20 = vld [vmem:[%s2892_s3] sm:$0xff]   ;;  %v2444_v23 = vld [vmem:[%s2893_s2 + $0x8] sm:$0xff]  }
   0x4   :  { %1982 = vmatprep.subr.bf16.mxu0 %v2358_v0  ;;  %1989 = vmatpush3.bf16.msra.mxu1 %v2426_v20  ;;  %v2437_v22 = vld [vmem:[%s2893_s2] sm:$0xff]   ;;  %v1826_v33 = vld [vmem:[%s2891_s0 + $0x8] sm:$0xff] }
   0x5   :  { %1990 = vmatprep.subr.bf16.mxu1 %v2358_v0  ;;  %v2479_v34 = vld [vmem:[%s2894_s4] ss:$0 sm:$0xff] }
   0x7   :  { %1983 = vmatpush3.bf16.msra.mxu0 %v2408_v2 }
   0x8   :  { %1996 = vmatprep.subr.bf16.mxu0 %v2358_v0  ;;  %1991 = vmatpush3.bf16.msra.mxu1 %v2431_v21 }
   0x9   :  { %2004 = vmatprep.subr.bf16.mxu1 %v2358_v0 }
   0xa   :  { %1985 = vmatmul.mubr.bf16.vlgmr.msra.gmra.mrb[0].mxu0 %v2360_v3 }
   0xb   :  { %2000 = vmatprep.mubr.msk.bf16.mxu0 %vm2359_vm0, %v2358_v0  ;;  %1997 = vmatpush3.bf16.msra.mxu0 %v2437_v22 }
   0xc   :  { %1998 = vmatprep.subr.bf16.mxu0 %v2358_v0  ;;  %1993 = vmatmul.mubr.bf16.vlgmr.msra.gmra.mrb[0].mxu1 %v2360_v3 }
   0xd   :  { %2005 = vmatpush3.bf16.msra.mxu1 %v2397_v1  ;;  %2008 = vmatprep.mubr.msk.bf16.mxu1 %vm2359_vm0, %v2358_v0 }
   0xe   :  { %2006 = vmatprep.subr.bf16.mxu1 %v2358_v0 }
   0xf   :  { %1999 = vmatpush3.bf16.msra.mxu0 %v2444_v23 }
  0x10   :  { %2012 = vmatprep.subr.bf16.mxu0 %v2358_v0 }
  0x11   :  { %2007 = vmatpush3.bf16.msra.mxu1 %v2408_v2 }
  0x12   :  { %2020 = vmatprep.subr.bf16.mxu1 %v2358_v0 }
  0xdd   :  { %v85_v5 = vpop.f32.mrb[0].mxu0 }
  0xde   :  { %v91_v6 = vadd.f32 %v85_v5, %v34_v4  ;;  %v1986_v7 = vpop.f32.mrb[1].mxu0 }
  0xdf   :  { %v88_v8 = vpop.f32.mrb[2].mxu0  ;;  %v163_v28 = vpop.f32.mrb[0].mxu1 }
  0xe0   :  { %2207 = vtanh.f32 %v91_v6  ;;  %v1987_v9 = vpop.f32.mrb[3].mxu0  ;;  %v1817_v11 = vmul.f32 -1.442695, %v91_v6  ;;  %v1994_v29 = vpop.f32.mrb[1].mxu1 }
  0xe1   :  { %v166_v30 = vpop.f32.mrb[2].mxu1  ;;  %v1834_v29 = vld [vmem:[%s2891_s0 + $0x10] sm:$0xff] }
  0xe2   :  { %2209 = vpow2.f32 %v1817_v11  ;;  %v1995_v31 = vpop.f32.mrb[3].mxu1 }
  0xea   :  { %v2208_v10 = vpop.eup %2207 }
  0xeb   :  { %101 = vrot.lane.b32.xlu0 %v2208_v10, %s2361_s24 }
  0xec   :  { %v2210_v12 = vpop.eup %2209 }
  0xed   :  { %v95_v13 = vadd.f32 1.0, %v2210_v12 }
  0xef   :  { %2211 = vrcp.f32 %v95_v13 }
  0xf9   :  { %v2212_v14 = vpop.eup %2211 }
  0xfa   :  { %v99_v17 = vmul.f32 0.0, %v2212_v14 }
 0x15d   :  { %v102_v15 = vpop.permute.xlu0 %101 }
 0x15e   :  { %v104_v16 = vmul.f32 %v2212_v14, %v102_v15 }
 0x160   :  { %106 = vrot.lane.b32.xlu0 %v104_v16, %s2362_s25 }
 0x1d2   :  { %v107_v18 = vpop.permute.xlu0 %106 }
 0x1d3   :  { %v2420_v19 = vadd.f32 %v107_v18, %v99_v17 }
 0x1d5   :  { %2213 = vtanh.f32 %v2420_v19 }
 0x1df   :  { %v2214_v24 = vpop.eup %2213 }
 0x1e0   :  { %112 = vrot.lane.b32.xlu1 %v2214_v24, %s2361_s24 }
 0x252   :  { %v113_v25 = vpop.permute.xlu1 %112 }
 0x253   :  { %v115_v26 = vmul.f32 %v2212_v14, %v113_v25 }
 0x255   :  { %v116_v27 = vpack.c.bf16 %v115_v26, %v115_v26 }
 0x257   :  { %170 = vrot.lane.b32.xlu1 %v116_v27, %s2362_s25 }
 0x2c9   :  { %v171_v32 = vpop.permute.xlu1 %170 }
 0x2ca   :  { %2001 = vmatmul.mubr.msk.bf16.vlgmr.msra.gmra.mrb[4].mxu0 %vm47_vm1, %v171_v32  ;;  %2009 = vmatmul.mubr.msk.bf16.vlgmr.msra.gmra.mrb[4].mxu1 %vm47_vm1, %v171_v32 }
 0x2cb   :  { %2021 = vmatpush3.bf16.msra.mxu1 %v2437_v22  ;;  %2013 = vmatpush3.bf16.msra.mxu0 %v2426_v20 }
 0x2cc   :  { %2022 = vmatprep.subr.bf16.mxu1 %v2358_v0  ;;  %2014 = vmatprep.subr.bf16.mxu0 %v2358_v0 }
 0x2cd   :  { %2024 = vmatprep.mubr.msk.bf16.mxu1 %vm2359_vm0, %v2358_v0  ;;  %2016 = vmatprep.mubr.msk.bf16.mxu0 %vm2359_vm0, %v2358_v0 }
 0x2cf   :  { %2023 = vmatpush3.bf16.msra.mxu1 %v2444_v23  ;;  %2015 = vmatpush3.bf16.msra.mxu0 %v2431_v21 }
 0x2d0   :  { %2028 = vmatprep.subr.bf16.mxu0 %v2358_v0  ;;  %2036 = vmatprep.subr.bf16.mxu1 %v2358_v0 }
 0x39d   :  { %v221_v35 = vpop.f32.mrb[4].mxu0  ;;  %v303_v36 = vpop.f32.mrb[4].mxu1 }
 0x39e   :  { %v222_v37 = vadd.f32 %v221_v35, %v163_v28  ;;  %v309_v38 = vadd.f32 %v1826_v33, %v303_v36  ;;  %v2002_v39 = vpop.f32.mrb[5].mxu0  ;;  %v2010_v40 = vpop.f32.mrb[5].mxu1 }
 0x39f   :  { %v224_v41 = vpop.f32.mrb[6].mxu0  ;;  %v306_v42 = vpop.f32.mrb[6].mxu1 }
 0x3a0   :  { %v233_v43 = vadd.f32 %v2479_v34, %v222_v37  ;;  %2215 = vtanh.f32 %v309_v38  ;;  %v2003_v44 = vpop.f32.mrb[7].mxu0  ;;  %v2011_v45 = vpop.f32.mrb[7].mxu1  ;;  %v1828_v48 = vmul.f32 -1.442695, %v309_v38 }
 0x3a2   :  { %2217 = vtanh.f32 %v233_v43  ;;  %v1824_v49 = vmul.f32 -1.442695, %v233_v43 }
 0x3a3   :  { %2219 = vpow2.f32 %v1828_v48 }
 0x3a4   :  { %2221 = vpow2.f32 %v1824_v49 }
 0x3aa   :  { %v2216_v46 = vpop.eup %2215 }
 0x3ab   :  { %319 = vrot.lane.b32.xlu1 %v2216_v46, %s2361_s24 }
 0x3ac   :  { %v2218_v47 = vpop.eup %2217 }
 0x3ad   :  { %243 = vrot.lane.b32.xlu0 %v2218_v47, %s2361_s24  ;;  %v2220_v50 = vpop.eup %2219 }
 0x3ae   :  { %v2222_v51 = vpop.eup %2221  ;;  %v313_v52 = vadd.f32 1.0, %v2220_v50 }
 0x3af   :  { %v237_v53 = vadd.f32 1.0, %v2222_v51 }
 0x3b0   :  { %2223 = vrcp.f32 %v313_v52 }
 0x3b1   :  { %2225 = vrcp.f32 %v237_v53 }
 0x3ba   :  { %v2224_v54 = vpop.eup %2223 }
 0x3bb   :  { %v2226_v57 = vpop.eup %2225  ;;  %v317_v60 = vmul.f32 %v2224_v54, %v2420_v19 }
 0x3bc   :  { %v241_v63 = vmul.f32 0.0, %v2226_v57 }
 0x41d   :  { %v320_v55 = vpop.permute.xlu1 %319 }
 0x41e   :  { %v322_v56 = vmul.f32 %v2224_v54, %v320_v55 }
 0x41f   :  { %v244_v58 = vpop.permute.xlu0 %243 }
 0x420   :  { %v246_v59 = vmul.f32 %v2226_v57, %v244_v58  ;;  %324 = vrot.lane.b32.xlu1 %v322_v56, %s2362_s25 }
 0x422   :  { %248 = vrot.lane.b32.xlu0 %v246_v59, %s2362_s25 }
 0x492   :  { %v325_v61 = vpop.permute.xlu1 %324 }
 0x493   :  { %v2487_v62 = vadd.f32 %v325_v61, %v317_v60 }
 0x494   :  { %v249_v3 = vpop.permute.xlu0 %248 }
 0x495   :  { %2227 = vtanh.f32 %v2487_v62  ;;  %v2490_v4 = vadd.f32 %v249_v3, %v241_v63 }
 0x497   :  { %2229 = vtanh.f32 %v2490_v4 }
 0x49f   :  { %v2228_v5 = vpop.eup %2227 }
 0x4a0   :  { %330 = vrot.lane.b32.xlu1 %v2228_v5, %s2361_s24 }
 0x4a1   :  { %v2230_v6 = vpop.eup %2229 }
 0x4a2   :  { %254 = vrot.lane.b32.xlu0 %v2230_v6, %s2361_s24 }
 0x512   :  { %v331_v7 = vpop.permute.xlu1 %330 }
 0x513   :  { %v333_v8 = vmul.f32 %v2224_v54, %v331_v7 }
 0x514   :  { %v255_v9 = vpop.permute.xlu0 %254 }
 0x515   :  { %v334_v10 = vpack.c.bf16 %v333_v8, %v333_v8  ;;  %v257_v11 = vmul.f32 %v2226_v57, %v255_v9 }
 0x517   :  { %v2495_v12 = vpack.c.bf16 %v257_v11, %v257_v11  ;;  %381 = vrot.lane.b32.xlu1 %v334_v10, %s2362_s25  ;;  %v1842_v10 = vld [vmem:[%s2891_s0 + $0x18] sm:$0xff] }
 0x519   :  { %335 = vrot.lane.b32.xlu0 %v2495_v12, %s2362_s25 }
 0x589   :  { %v382_v13 = vpop.permute.xlu1 %381 }
 0x58a   :  { %2025 = vmatmul.mubr.msk.bf16.vlgmr.msra.gmra.mrb[8].mxu1 %vm47_vm1, %v382_v13 }
 0x58b   :  { %v336_v14 = vpop.permute.xlu0 %335  ;;  %2037 = vmatpush3.bf16.msra.mxu1 %v2426_v20  ;;  %2040 = vmatprep.mubr.msk.bf16.mxu1 %vm2359_vm0, %v2358_v0 }
 0x58c   :  { %2017 = vmatmul.mubr.msk.bf16.vlgmr.msra.gmra.mrb[8].mxu0 %vm47_vm1, %v336_v14  ;;  %2038 = vmatprep.subr.bf16.mxu1 %v2358_v0 }
 0x58d   :  { %2029 = vmatpush3.bf16.msra.mxu0 %v2397_v1  ;;  %2032 = vmatprep.mubr.msk.bf16.mxu0 %vm2359_vm0, %v2358_v0 }
 0x58e   :  { %2030 = vmatprep.subr.bf16.mxu0 %v2358_v0 }
 0x58f   :  { %2039 = vmatpush3.bf16.msra.mxu1 %v2431_v21 }
 0x590   :  { %2052 = vmatprep.subr.bf16.mxu1 %v2358_v0 }
 0x591   :  { %2031 = vmatpush3.bf16.msra.mxu0 %v2408_v2 }
 0x592   :  { %2044 = vmatprep.subr.bf16.mxu0 %v2358_v0 }
 0x594   :  { %2033 = vmatmul.mubr.msk.bf16.vlgmr.msra.gmra.mrb[12].mxu0 %vm47_vm1, %v382_v13 }
 0x595   :  { %2045 = vmatpush3.bf16.msra.mxu0 %v2437_v22  ;;  %2048 = vmatprep.mubr.msk.bf16.mxu0 %vm2359_vm0, %v2358_v0 }
 0x596   :  { %2046 = vmatprep.subr.bf16.mxu0 %v2358_v0 }
 0x599   :  { %2047 = vmatpush3.bf16.msra.mxu0 %v2444_v23 }
 0x59a   :  { %2060 = vmatprep.subr.bf16.mxu0 %v2358_v0 }
 0x65d   :  { %v420_v15 = vpop.f32.mrb[8].mxu1 }
 0x65e   :  { %v2026_v16 = vpop.f32.mrb[9].mxu1 }
 0x65f   :  { %v374_v17 = vpop.f32.mrb[8].mxu0  ;;  %v423_v18 = vpop.f32.mrb[10].mxu1 }
 0x660   :  { %v421_v19 = vadd.f32 %v420_v15, %v374_v17  ;;  %v2018_v24 = vpop.f32.mrb[9].mxu0  ;;  %v2027_v25 = vpop.f32.mrb[11].mxu1 }
 0x661   :  { %v377_v26 = vpop.f32.mrb[10].mxu0 }
 0x662   :  { %v426_v27 = vadd.f32 %v2479_v34, %v421_v19  ;;  %v2019_v28 = vpop.f32.mrb[11].mxu0 }
 0x664   :  { %2231 = vtanh.f32 %v426_v27  ;;  %v1831_v38 = vmul.f32 -1.442695, %v426_v27 }
 0x667   :  { %v496_v30 = vpop.f32.mrb[12].mxu0 }
 0x668   :  { %v502_v31 = vadd.f32 %v1834_v29, %v496_v30  ;;  %v2034_v32 = vpop.f32.mrb[13].mxu0 }
 0x669   :  { %v499_v33 = vpop.f32.mrb[14].mxu0 }
 0x66a   :  { %2233 = vtanh.f32 %v502_v31  ;;  %v2035_v35 = vpop.f32.mrb[15].mxu0  ;;  %v1836_v39 = vmul.f32 -1.442695, %v502_v31 }
 0x66b   :  { %2235 = vpow2.f32 %v1831_v38 }
 0x66c   :  { %2237 = vpow2.f32 %v1836_v39 }
 0x66e   :  { %v2232_v36 = vpop.eup %2231 }
 0x66f   :  { %436 = vrot.lane.b32.xlu0 %v2232_v36, %s2361_s24 }
 0x674   :  { %v2234_v37 = vpop.eup %2233 }
 0x675   :  { %512 = vrot.lane.b32.xlu1 %v2234_v37, %s2361_s24  ;;  %v2236_v40 = vpop.eup %2235 }
 0x676   :  { %v430_v41 = vadd.f32 1.0, %v2236_v40  ;;  %v2238_v42 = vpop.eup %2237 }
 0x677   :  { %v506_v43 = vadd.f32 1.0, %v2238_v42 }
 0x678   :  { %2239 = vrcp.f32 %v430_v41 }
 0x679   :  { %2241 = vrcp.f32 %v506_v43 }
 0x682   :  { %v2240_v44 = vpop.eup %2239 }
 0x683   :  { %v2242_v47 = vpop.eup %2241  ;;  %v434_v50 = vmul.f32 %v2240_v44, %v2490_v4 }
 0x684   :  { %v510_v53 = vmul.f32 %v2242_v47, %v2487_v62 }
 0x6e1   :  { %v437_v45 = vpop.permute.xlu0 %436 }
 0x6e2   :  { %v439_v46 = vmul.f32 %v2240_v44, %v437_v45 }
 0x6e4   :  { %441 = vrot.lane.b32.xlu0 %v439_v46, %s2362_s25 }
 0x6e7   :  { %v513_v48 = vpop.permute.xlu1 %512 }
 0x6e8   :  { %v515_v49 = vmul.f32 %v2242_v47, %v513_v48 }
 0x6ea   :  { %517 = vrot.lane.b32.xlu1 %v515_v49, %s2362_s25 }
 0x756   :  { %v442_v51 = vpop.permute.xlu0 %441 }
 0x757   :  { %v2530_v52 = vadd.f32 %v442_v51, %v434_v50 }
 0x759   :  { %2243 = vtanh.f32 %v2530_v52 }
 0x75c   :  { %v518_v54 = vpop.permute.xlu1 %517 }
 0x75d   :  { %v2534_v55 = vadd.f32 %v518_v54, %v510_v53 }
 0x75f   :  { %2245 = vtanh.f32 %v2534_v55 }
 0x763   :  { %v2244_v56 = vpop.eup %2243 }
 0x764   :  { %447 = vrot.lane.b32.xlu0 %v2244_v56, %s2361_s24 }
 0x769   :  { %v2246_v57 = vpop.eup %2245 }
 0x76a   :  { %523 = vrot.lane.b32.xlu1 %v2246_v57, %s2361_s24 }
 0x7d6   :  { %v448_v58 = vpop.permute.xlu0 %447 }
 0x7d7   :  { %v450_v59 = vmul.f32 %v2240_v44, %v448_v58 }
 0x7d9   :  { %v2539_v60 = vpack.c.bf16 %v450_v59, %v450_v59 }
 0x7db   :  { %528 = vrot.lane.b32.xlu0 %v2539_v60, %s2362_s25 }
 0x7dc   :  { %v524_v61 = vpop.permute.xlu1 %523 }
 0x7dd   :  { %v526_v62 = vmul.f32 %v2242_v47, %v524_v61 }
 0x7df   :  { %v527_v63 = vpack.c.bf16 %v526_v62, %v526_v62 }
 0x7e1   :  { %574 = vrot.lane.b32.xlu1 %v527_v63, %s2362_s25 }
 0x84d   :  { %v529_v3 = vpop.permute.xlu0 %528 }
 0x84e   :  { %2041 = vmatmul.mubr.msk.bf16.vlgmr.msra.gmra.mrb[12].mxu1 %vm47_vm1, %v529_v3 }
 0x84f   :  { %2053 = vmatpush3.bf16.msra.mxu1 %v2397_v1  ;;  %2056 = vmatprep.mubr.msk.bf16.mxu1 %vm2359_vm0, %v2358_v0 }
 0x850   :  { %2054 = vmatprep.subr.bf16.mxu1 %v2358_v0 }
 0x853   :  { %2055 = vmatpush3.bf16.msra.mxu1 %v2408_v2  ;;  %v575_v4 = vpop.permute.xlu1 %574 }
 0x854   :  { %2049 = vmatmul.mubr.msk.bf16.vlgmr.msra.gmra.mrb[16].mxu0 %vm47_vm1, %v575_v4  ;;  %2068 = vmatprep.subr.bf16.mxu1 %v2358_v0 }
 0x855   :  { %2061 = vmatpush3.bf16.msra.mxu0 %v2426_v20  ;;  %2064 = vmatprep.mubr.msk.bf16.mxu0 %vm2359_vm0, %v2358_v0 }
 0x856   :  { %2057 = vmatmul.mubr.msk.bf16.vlgmr.msra.gmra.mrb[16].mxu1 %vm47_vm1, %v575_v4  ;;  %2062 = vmatprep.subr.bf16.mxu0 %v2358_v0 }
 0x857   :  { %2069 = vmatpush3.bf16.msra.mxu1 %v2437_v22  ;;  %2072 = vmatprep.mubr.msk.bf16.mxu1 %vm2359_vm0, %v2358_v0 }
 0x858   :  { %2070 = vmatprep.subr.bf16.mxu1 %v2358_v0 }
 0x859   :  { %2063 = vmatpush3.bf16.msra.mxu0 %v2431_v21 }
 0x85a   :  { %2076 = vmatprep.subr.bf16.mxu0 %v2358_v0 }
 0x85b   :  { %2071 = vmatpush3.bf16.msra.mxu1 %v2444_v23 }
 0x85c   :  { %2084 = vmatprep.subr.bf16.mxu1 %v2358_v0 }
 0x921   :  { %v567_v5 = vpop.f32.mrb[12].mxu1 }
 0x922   :  { %v2042_v6 = vpop.f32.mrb[13].mxu1 }
 0x923   :  { %v570_v7 = vpop.f32.mrb[14].mxu1 }
 0x924   :  { %v2043_v8 = vpop.f32.mrb[15].mxu1  ;;  %v1850_v7 = vld [vmem:[%s2891_s0 + $0x20] sm:$0xff] }
 0x927   :  { %v613_v9 = vpop.f32.mrb[16].mxu0 }
 0x928   :  { %v614_v11 = vadd.f32 %v613_v9, %v567_v5  ;;  %v2050_v13 = vpop.f32.mrb[17].mxu0 }
 0x929   :  { %v616_v14 = vpop.f32.mrb[18].mxu0  ;;  %v689_v15 = vpop.f32.mrb[16].mxu1 }
 0x92a   :  { %v619_v16 = vadd.f32 %v2479_v34, %v614_v11  ;;  %v695_v17 = vadd.f32 %v1842_v10, %v689_v15  ;;  %v2051_v18 = vpop.f32.mrb[19].mxu0  ;;  %v2058_v19 = vpop.f32.mrb[17].mxu1 }
 0x92b   :  { %v692_v24 = vpop.f32.mrb[18].mxu1 }
 0x92c   :  { %2247 = vtanh.f32 %v619_v16  ;;  %v2059_v25 = vpop.f32.mrb[19].mxu1  ;;  %v1839_v28 = vmul.f32 -1.442695, %v619_v16  ;;  %v1844_v29 = vmul.f32 -1.442695, %v695_v17 }
 0x92d   :  { %2249 = vtanh.f32 %v695_v17 }
 0x92e   :  { %2251 = vpow2.f32 %v1839_v28 }
 0x92f   :  { %2253 = vpow2.f32 %v1844_v29 }
 0x936   :  { %v2248_v26 = vpop.eup %2247 }
 0x937   :  { %v2250_v27 = vpop.eup %2249  ;;  %629 = vrot.lane.b32.xlu0 %v2248_v26, %s2361_s24 }
 0x938   :  { %705 = vrot.lane.b32.xlu1 %v2250_v27, %s2361_s24  ;;  %v2252_v30 = vpop.eup %2251 }
 0x939   :  { %v2254_v31 = vpop.eup %2253  ;;  %v623_v32 = vadd.f32 1.0, %v2252_v30 }
 0x93a   :  { %v699_v33 = vadd.f32 1.0, %v2254_v31 }
 0x93b   :  { %2255 = vrcp.f32 %v623_v32 }
 0x93c   :  { %2257 = vrcp.f32 %v699_v33 }
 0x945   :  { %v2256_v35 = vpop.eup %2255 }
 0x946   :  { %v2258_v37 = vpop.eup %2257  ;;  %v627_v41 = vmul.f32 %v2256_v35, %v2530_v52 }
 0x947   :  { %v703_v42 = vmul.f32 %v2258_v37, %v2534_v55 }
 0x9a9   :  { %v630_v36 = vpop.permute.xlu0 %629 }
 0x9aa   :  { %v706_v38 = vpop.permute.xlu1 %705  ;;  %v632_v39 = vmul.f32 %v2256_v35, %v630_v36 }
 0x9ab   :  { %v708_v40 = vmul.f32 %v2258_v37, %v706_v38 }
 0x9ac   :  { %634 = vrot.lane.b32.xlu0 %v632_v39, %s2362_s25 }
 0x9ad   :  { %710 = vrot.lane.b32.xlu1 %v708_v40, %s2362_s25 }
 0xa1e   :  { %v635_v43 = vpop.permute.xlu0 %634 }
 0xa1f   :  { %v711_v44 = vpop.permute.xlu1 %710  ;;  %v2575_v45 = vadd.f32 %v635_v43, %v627_v41 }
 0xa20   :  { %v2577_v46 = vadd.f32 %v711_v44, %v703_v42 }
 0xa21   :  { %2259 = vtanh.f32 %v2575_v45 }
 0xa22   :  { %2261 = vtanh.f32 %v2577_v46 }
 0xa2b   :  { %v2260_v47 = vpop.eup %2259 }
 0xa2c   :  { %v2262_v48 = vpop.eup %2261  ;;  %640 = vrot.lane.b32.xlu0 %v2260_v47, %s2361_s24 }
 0xa2d   :  { %716 = vrot.lane.b32.xlu1 %v2262_v48, %s2361_s24 }
 0xa9e   :  { %v641_v49 = vpop.permute.xlu0 %640 }
 0xa9f   :  { %v717_v50 = vpop.permute.xlu1 %716  ;;  %v643_v51 = vmul.f32 %v2256_v35, %v641_v49 }
 0xaa0   :  { %v719_v52 = vmul.f32 %v2258_v37, %v717_v50 }
 0xaa1   :  { %v2583_v53 = vpack.c.bf16 %v643_v51, %v643_v51 }
 0xaa2   :  { %v720_v54 = vpack.c.bf16 %v719_v52, %v719_v52 }
 0xaa3   :  { %721 = vrot.lane.b32.xlu0 %v2583_v53, %s2362_s25 }
 0xaa4   :  { %767 = vrot.lane.b32.xlu1 %v720_v54, %s2362_s25 }
 0xb15   :  { %v722_v55 = vpop.permute.xlu0 %721 }
 0xb16   :  { %v768_v56 = vpop.permute.xlu1 %767  ;;  %2065 = vmatmul.mubr.msk.bf16.vlgmr.msra.gmra.mrb[20].mxu0 %vm47_vm1, %v722_v55 }
 0xb17   :  { %2073 = vmatmul.mubr.msk.bf16.vlgmr.msra.gmra.mrb[20].mxu1 %vm47_vm1, %v768_v56  ;;  %2077 = vmatpush3.bf16.msra.mxu0 %v2397_v1 }
 0xb18   :  { %2078 = vmatprep.subr.bf16.mxu0 %v2358_v0  ;;  %2080 = vmatprep.mubr.msk.bf16.mxu0 %vm2359_vm0, %v2358_v0 }
 0xb19   :  { %2085 = vmatpush3.bf16.msra.mxu1 %v2426_v20  ;;  %2088 = vmatprep.mubr.msk.bf16.mxu1 %vm2359_vm0, %v2358_v0 }
 0xb1a   :  { %2086 = vmatprep.subr.bf16.mxu1 %v2358_v0 }
 0xb1b   :  { %2079 = vmatpush3.bf16.msra.mxu0 %v2408_v2 }
 0xb1c   :  { %2092 = vmatprep.subr.bf16.mxu0 %v2358_v0 }
 0xb1d   :  { %2087 = vmatpush3.bf16.msra.mxu1 %v2431_v21 }
 0xb1e   :  { %2081 = vmatmul.mubr.msk.bf16.vlgmr.msra.gmra.mrb[24].mxu0 %vm47_vm1, %v768_v56  ;;  %2100 = vmatprep.subr.bf16.mxu1 %v2358_v0 }
 0xb1f   :  { %2093 = vmatpush3.bf16.msra.mxu0 %v2437_v22  ;;  %2096 = vmatprep.mubr.msk.bf16.mxu0 %vm2359_vm0, %v2358_v0 }
 0xb20   :  { %2094 = vmatprep.subr.bf16.mxu0 %v2358_v0 }
 0xb23   :  { %2095 = vmatpush3.bf16.msra.mxu0 %v2444_v23 }
 0xb24   :  { %2108 = vmatprep.subr.bf16.mxu0 %v2358_v0 }
 0xbe9   :  { %v760_v57 = vpop.f32.mrb[20].mxu0 }
 0xbea   :  { %v806_v58 = vpop.f32.mrb[20].mxu1  ;;  %v2066_v59 = vpop.f32.mrb[21].mxu0 }
 0xbeb   :  { %v807_v61 = vadd.f32 %v806_v58, %v760_v57  ;;  %v2074_v62 = vpop.f32.mrb[21].mxu1  ;;  %v763_v63 = vpop.f32.mrb[22].mxu0  ;;  %v1858_v57 = vld [vmem:[%s2891_s0 + $0x28] sm:$0xff] }
 0xbec   :  { %v809_v3 = vpop.f32.mrb[22].mxu1  ;;  %v2067_v4 = vpop.f32.mrb[23].mxu0 }
 0xbed   :  { %v812_v5 = vadd.f32 %v2479_v34, %v807_v61  ;;  %v2075_v6 = vpop.f32.mrb[23].mxu1 }
 0xbef   :  { %2263 = vtanh.f32 %v812_v5  ;;  %v1847_v16 = vmul.f32 -1.442695, %v812_v5 }
 0xbf1   :  { %v882_v8 = vpop.f32.mrb[24].mxu0 }
 0xbf2   :  { %v888_v9 = vadd.f32 %v1850_v7, %v882_v8  ;;  %v2082_v10 = vpop.f32.mrb[25].mxu0 }
 0xbf3   :  { %v885_v11 = vpop.f32.mrb[26].mxu0 }
 0xbf4   :  { %2265 = vtanh.f32 %v888_v9  ;;  %v2083_v13 = vpop.f32.mrb[27].mxu0  ;;  %v1852_v17 = vmul.f32 -1.442695, %v888_v9 }
 0xbf5   :  { %2267 = vpow2.f32 %v1847_v16 }
 0xbf6   :  { %2269 = vpow2.f32 %v1852_v17 }
 0xbf9   :  { %v2264_v14 = vpop.eup %2263 }
 0xbfa   :  { %822 = vrot.lane.b32.xlu0 %v2264_v14, %s2361_s24 }
 0xbfe   :  { %v2266_v15 = vpop.eup %2265 }
 0xbff   :  { %898 = vrot.lane.b32.xlu1 %v2266_v15, %s2361_s24  ;;  %v2268_v18 = vpop.eup %2267 }
 0xc00   :  { %v816_v19 = vadd.f32 1.0, %v2268_v18  ;;  %v2270_v24 = vpop.eup %2269 }
 0xc01   :  { %v892_v25 = vadd.f32 1.0, %v2270_v24 }
 0xc02   :  { %2271 = vrcp.f32 %v816_v19 }
 0xc03   :  { %2273 = vrcp.f32 %v892_v25 }
 0xc0c   :  { %v2272_v26 = vpop.eup %2271 }
 0xc0d   :  { %v2274_v29 = vpop.eup %2273  ;;  %v820_v32 = vmul.f32 %v2272_v26, %v2575_v45 }
 0xc0e   :  { %v896_v36 = vmul.f32 %v2274_v29, %v2577_v46 }
 0xc6c   :  { %v823_v27 = vpop.permute.xlu0 %822 }
 0xc6d   :  { %v825_v28 = vmul.f32 %v2272_v26, %v823_v27 }
 0xc6f   :  { %827 = vrot.lane.b32.xlu0 %v825_v28, %s2362_s25 }
 0xc71   :  { %v899_v30 = vpop.permute.xlu1 %898 }
 0xc72   :  { %v901_v31 = vmul.f32 %v2274_v29, %v899_v30 }
 0xc74   :  { %903 = vrot.lane.b32.xlu1 %v901_v31, %s2362_s25 }
 0xce1   :  { %v828_v33 = vpop.permute.xlu0 %827 }
 0xce2   :  { %v2618_v35 = vadd.f32 %v828_v33, %v820_v32 }
 0xce4   :  { %2275 = vtanh.f32 %v2618_v35 }
 0xce6   :  { %v904_v37 = vpop.permute.xlu1 %903 }
 0xce7   :  { %v2622_v38 = vadd.f32 %v904_v37, %v896_v36 }
 0xce9   :  { %2277 = vtanh.f32 %v2622_v38 }
 0xcee   :  { %v2276_v39 = vpop.eup %2275 }
 0xcef   :  { %833 = vrot.lane.b32.xlu0 %v2276_v39, %s2361_s24 }
 0xcf3   :  { %v2278_v40 = vpop.eup %2277 }
 0xcf4   :  { %909 = vrot.lane.b32.xlu1 %v2278_v40, %s2361_s24 }
 0xd61   :  { %v834_v41 = vpop.permute.xlu0 %833 }
 0xd62   :  { %v836_v42 = vmul.f32 %v2272_v26, %v834_v41 }
 0xd64   :  { %v2627_v43 = vpack.c.bf16 %v836_v42, %v836_v42 }
 0xd66   :  { %914 = vrot.lane.b32.xlu0 %v2627_v43, %s2362_s25  ;;  %v910_v44 = vpop.permute.xlu1 %909 }
 0xd67   :  { %v912_v45 = vmul.f32 %v2274_v29, %v910_v44 }
 0xd69   :  { %v913_v46 = vpack.c.bf16 %v912_v45, %v912_v45 }
 0xd6b   :  { %960 = vrot.lane.b32.xlu1 %v913_v46, %s2362_s25 }
 0xdd8   :  { %v915_v47 = vpop.permute.xlu0 %914 }
 0xdd9   :  { %2089 = vmatmul.mubr.msk.bf16.vlgmr.msra.gmra.mrb[24].mxu1 %vm47_vm1, %v915_v47 }
 0xdda   :  { %2101 = vmatpush3.bf16.msra.mxu1 %v2397_v1  ;;  %2104 = vmatprep.mubr.msk.bf16.mxu1 %vm2359_vm0, %v2358_v0 }
 0xddb   :  { %2102 = vmatprep.subr.bf16.mxu1 %v2358_v0 }
 0xddd   :  { %v961_v48 = vpop.permute.xlu1 %960 }
 0xdde   :  { %2103 = vmatpush3.bf16.msra.mxu1 %v2408_v2  ;;  %2097 = vmatmul.mubr.msk.bf16.vlgmr.msra.gmra.mrb[28].mxu0 %vm47_vm1, %v961_v48 }
 0xddf   :  { %2109 = vmatpush3.bf16.msra.mxu0 %v2426_v20  ;;  %2116 = vmatprep.subr.bf16.mxu1 %v2358_v0 }
 0xde0   :  { %2110 = vmatprep.subr.bf16.mxu0 %v2358_v0  ;;  %2112 = vmatprep.mubr.msk.bf16.mxu0 %vm2359_vm0, %v2358_v0 }
 0xde1   :  { %2105 = vmatmul.mubr.msk.bf16.vlgmr.msra.gmra.mrb[28].mxu1 %vm47_vm1, %v961_v48  ;;  %v1866_v48 = vld [vmem:[%s2891_s0 + $0x30] sm:$0xff] }
 0xde2   :  { %2117 = vmatpush3.bf16.msra.mxu1 %v2437_v22  ;;  %2120 = vmatprep.mubr.msk.bf16.mxu1 %vm2359_vm0, %v2358_v0 }
 0xde3   :  { %2111 = vmatpush3.bf16.msra.mxu0 %v2431_v21  ;;  %2118 = vmatprep.subr.bf16.mxu1 %v2358_v0 }
 0xde4   :  { %2124 = vmatprep.subr.bf16.mxu0 %v2358_v0 }
 0xde6   :  { %2119 = vmatpush3.bf16.msra.mxu1 %v2444_v23 }
 0xde7   :  { %2132 = vmatprep.subr.bf16.mxu1 %v2358_v0 }
 0xeac   :  { %v953_v49 = vpop.f32.mrb[24].mxu1 }
 0xead   :  { %v2090_v50 = vpop.f32.mrb[25].mxu1 }
 0xeae   :  { %v956_v51 = vpop.f32.mrb[26].mxu1 }
 0xeaf   :  { %v2091_v52 = vpop.f32.mrb[27].mxu1 }
 0xeb1   :  { %v999_v54 = vpop.f32.mrb[28].mxu0 }
 0xeb2   :  { %v1000_v55 = vadd.f32 %v999_v54, %v953_v49  ;;  %v2098_v56 = vpop.f32.mrb[29].mxu0 }
 0xeb3   :  { %v1002_v58 = vpop.f32.mrb[30].mxu0 }
 0xeb4   :  { %v1005_v59 = vadd.f32 %v2479_v34, %v1000_v55  ;;  %v1075_v61 = vpop.f32.mrb[28].mxu1  ;;  %v2099_v62 = vpop.f32.mrb[31].mxu0 }
 0xeb5   :  { %v1081_v63 = vadd.f32 %v1858_v57, %v1075_v61  ;;  %v2106_v3 = vpop.f32.mrb[29].mxu1 }
 0xeb6   :  { %2279 = vtanh.f32 %v1005_v59  ;;  %v1078_v4 = vpop.f32.mrb[30].mxu1  ;;  %v1855_v8 = vmul.f32 -1.442695, %v1005_v59 }
 0xeb7   :  { %2281 = vtanh.f32 %v1081_v63  ;;  %v2107_v5 = vpop.f32.mrb[31].mxu1  ;;  %v1860_v9 = vmul.f32 -1.442695, %v1081_v63 }
 0xeb8   :  { %2283 = vpow2.f32 %v1855_v8 }
 0xeb9   :  { %2285 = vpow2.f32 %v1860_v9 }
 0xec0   :  { %v2280_v6 = vpop.eup %2279 }
 0xec1   :  { %v2282_v7 = vpop.eup %2281  ;;  %1015 = vrot.lane.b32.xlu0 %v2280_v6, %s2361_s24 }
 0xec2   :  { %1091 = vrot.lane.b32.xlu1 %v2282_v7, %s2361_s24  ;;  %v2284_v10 = vpop.eup %2283 }
 0xec3   :  { %v2286_v11 = vpop.eup %2285  ;;  %v1009_v13 = vadd.f32 1.0, %v2284_v10 }
 0xec4   :  { %v1085_v14 = vadd.f32 1.0, %v2286_v11 }
 0xec5   :  { %2287 = vrcp.f32 %v1009_v13 }
 0xec6   :  { %2289 = vrcp.f32 %v1085_v14 }
 0xecf   :  { %v2288_v15 = vpop.eup %2287 }
 0xed0   :  { %v2290_v17 = vpop.eup %2289  ;;  %v1013_v25 = vmul.f32 %v2288_v15, %v2618_v35 }
 0xed1   :  { %v1089_v26 = vmul.f32 %v2290_v17, %v2622_v38 }
 0xf33   :  { %v1016_v16 = vpop.permute.xlu0 %1015 }
 0xf34   :  { %v1092_v18 = vpop.permute.xlu1 %1091  ;;  %v1018_v19 = vmul.f32 %v2288_v15, %v1016_v16 }
 0xf35   :  { %v1094_v24 = vmul.f32 %v2290_v17, %v1092_v18 }
 0xf36   :  { %1020 = vrot.lane.b32.xlu0 %v1018_v19, %s2362_s25 }
 0xf37   :  { %1096 = vrot.lane.b32.xlu1 %v1094_v24, %s2362_s25 }
 0xfa8   :  { %v1021_v27 = vpop.permute.xlu0 %1020 }
 0xfa9   :  { %v1097_v28 = vpop.permute.xlu1 %1096  ;;  %v2663_v29 = vadd.f32 %v1021_v27, %v1013_v25 }
 0xfaa   :  { %v2665_v30 = vadd.f32 %v1097_v28, %v1089_v26  ;;  %v2724_v28 = vld [vmem:[%s2890_s1] sm:$0xff]  }
 0xfab   :  { %2291 = vtanh.f32 %v2663_v29 }
 0xfac   :  { %2293 = vtanh.f32 %v2665_v30 }
 0xfb5   :  { %v2292_v31 = vpop.eup %2291 }
 0xfb6   :  { %v2294_v32 = vpop.eup %2293  ;;  %1026 = vrot.lane.b32.xlu0 %v2292_v31, %s2361_s24  ;;  %v2740_v31 = vld [vmem:[%s2892_s3] sm:$0xff]  }
 0xfb7   :  { %1102 = vrot.lane.b32.xlu1 %v2294_v32, %s2361_s24  ;;  %v2751_v32 = vld [vmem:[%s2893_s2] sm:$0xff]  }
0x1028   :  { %v1027_v33 = vpop.permute.xlu0 %1026 }
0x1029   :  { %v1103_v35 = vpop.permute.xlu1 %1102  ;;  %v1029_v36 = vmul.f32 %v2288_v15, %v1027_v33  ;;  %v2759_v33 = vld [vmem:[%s2892_s3 + $0x8] sm:$0xff]  }
0x102a   :  { %v1105_v37 = vmul.f32 %v2290_v17, %v1103_v35  ;;  %v2767_v35 = vld [vmem:[%s2893_s2 + $0x8] sm:$0xff]  }
0x102b   :  { %v2671_v38 = vpack.c.bf16 %v1029_v36, %v1029_v36 }
0x102c   :  { %v1106_v39 = vpack.c.bf16 %v1105_v37, %v1105_v37 }
0x102d   :  { %1107 = vrot.lane.b32.xlu0 %v2671_v38, %s2362_s25 }
0x102e   :  { %1153 = vrot.lane.b32.xlu1 %v1106_v39, %s2362_s25 }
0x109f   :  { %v1108_v40 = vpop.permute.xlu0 %1107 }
0x10a0   :  { %v1154_v41 = vpop.permute.xlu1 %1153  ;;  %2113 = vmatmul.mubr.msk.bf16.vlgmr.msra.gmra.mrb[32].mxu0 %vm47_vm1, %v1108_v40 }
0x10a1   :  { %2121 = vmatmul.mubr.msk.bf16.vlgmr.msra.gmra.mrb[32].mxu1 %vm47_vm1, %v1154_v41  ;;  %2125 = vmatpush3.bf16.msra.mxu0 %v2397_v1 }
0x10a2   :  { %2126 = vmatprep.subr.bf16.mxu0 %v2358_v0  ;;  %2128 = vmatprep.mubr.msk.bf16.mxu0 %vm2359_vm0, %v2358_v0 }
0x10a3   :  { %2133 = vmatpush3.bf16.msra.mxu1 %v2426_v20  ;;  %2136 = vmatprep.mubr.msk.bf16.mxu1 %vm2359_vm0, %v2358_v0 }
0x10a4   :  { %2134 = vmatprep.subr.bf16.mxu1 %v2358_v0 }
0x10a5   :  { %2127 = vmatpush3.bf16.msra.mxu0 %v2408_v2 }
0x10a6   :  { %2140 = vmatprep.subr.bf16.mxu0 %v2358_v0 }
0x10a7   :  { %2135 = vmatpush3.bf16.msra.mxu1 %v2431_v21 }
0x10a8   :  { %2129 = vmatmul.mubr.msk.bf16.vlgmr.msra.gmra.mrb[36].mxu0 %vm47_vm1, %v1154_v41  ;;  %2148 = vmatprep.subr.bf16.mxu1 %v2358_v0 }
0x10a9   :  { %2141 = vmatpush3.bf16.msra.mxu0 %v2437_v22  ;;  %2144 = vmatprep.mubr.msk.bf16.mxu0 %vm2359_vm0, %v2358_v0 }
0x10aa   :  { %2142 = vmatprep.subr.bf16.mxu0 %v2358_v0 }
0x10ad   :  { %2143 = vmatpush3.bf16.msra.mxu0 %v2444_v23 }
0x10ae   :  { %2156 = vmatprep.subr.bf16.mxu0 %v2358_v0 }
0x1173   :  { %v1146_v1 = vpop.f32.mrb[32].mxu0 }
0x1174   :  { %v1192_v2 = vpop.f32.mrb[32].mxu1  ;;  %v2114_v20 = vpop.f32.mrb[33].mxu0 }
0x1175   :  { %v1193_v42 = vadd.f32 %v1192_v2, %v1146_v1  ;;  %v2122_v21 = vpop.f32.mrb[33].mxu1  ;;  %v1149_v44 = vpop.f32.mrb[34].mxu0  ;;  %v1874_v20 = vld [vmem:[%s2891_s0 + $0x38] sm:$0xff] }
0x1176   :  { %v1195_v45 = vpop.f32.mrb[34].mxu1  ;;  %v2115_v46 = vpop.f32.mrb[35].mxu0 }
0x1177   :  { %v1198_v47 = vadd.f32 %v2479_v34, %v1193_v42  ;;  %v2123_v22 = vpop.f32.mrb[35].mxu1 }
0x1179   :  { %2295 = vtanh.f32 %v1198_v47  ;;  %v1863_v56 = vmul.f32 -1.442695, %v1198_v47 }
0x117b   :  { %v1268_v49 = vpop.f32.mrb[36].mxu0 }
0x117c   :  { %v1274_v23 = vadd.f32 %v1866_v48, %v1268_v49  ;;  %v2130_v50 = vpop.f32.mrb[37].mxu0 }
0x117d   :  { %v1271_v51 = vpop.f32.mrb[38].mxu0 }
0x117e   :  { %2297 = vtanh.f32 %v1274_v23  ;;  %v2131_v52 = vpop.f32.mrb[39].mxu0  ;;  %v1868_v57 = vmul.f32 -1.442695, %v1274_v23 }
0x117f   :  { %2299 = vpow2.f32 %v1863_v56 }
0x1180   :  { %2301 = vpow2.f32 %v1868_v57 }
0x1183   :  { %v2296_v54 = vpop.eup %2295 }
0x1184   :  { %1208 = vrot.lane.b32.xlu0 %v2296_v54, %s2361_s24 }
0x1188   :  { %v2298_v55 = vpop.eup %2297 }
0x1189   :  { %1284 = vrot.lane.b32.xlu1 %v2298_v55, %s2361_s24  ;;  %v2300_v58 = vpop.eup %2299 }
0x118a   :  { %v1202_v59 = vadd.f32 1.0, %v2300_v58  ;;  %v2302_v61 = vpop.eup %2301 }
0x118b   :  { %v1278_v62 = vadd.f32 1.0, %v2302_v61 }
0x118c   :  { %2303 = vrcp.f32 %v1202_v59 }
0x118d   :  { %2305 = vrcp.f32 %v1278_v62 }
0x1196   :  { %v2304_v63 = vpop.eup %2303 }
0x1197   :  { %v2306_v5 = vpop.eup %2305  ;;  %v1206_v8 = vmul.f32 %v2304_v63, %v2663_v29 }
0x1198   :  { %v1282_v11 = vmul.f32 %v2306_v5, %v2665_v30  ;;  %v2733_v30 = vld [vmem:[%s2890_s1 + $0x8] sm:$0xff]  }
0x11f6   :  { %v1209_v3 = vpop.permute.xlu0 %1208 }
0x11f7   :  { %v1211_v4 = vmul.f32 %v2304_v63, %v1209_v3 }
0x11f9   :  { %1213 = vrot.lane.b32.xlu0 %v1211_v4, %s2362_s25 }
0x11fb   :  { %v1285_v6 = vpop.permute.xlu1 %1284 }
0x11fc   :  { %v1287_v7 = vmul.f32 %v2306_v5, %v1285_v6 }
0x11fe   :  { %1289 = vrot.lane.b32.xlu1 %v1287_v7, %s2362_s25 }
0x126b   :  { %v1214_v9 = vpop.permute.xlu0 %1213 }
0x126c   :  { %v2706_v10 = vadd.f32 %v1214_v9, %v1206_v8 }
0x126e   :  { %2307 = vtanh.f32 %v2706_v10 }
0x1270   :  { %v1290_v13 = vpop.permute.xlu1 %1289 }
0x1271   :  { %v2710_v14 = vadd.f32 %v1290_v13, %v1282_v11 }
0x1273   :  { %2309 = vtanh.f32 %v2710_v14 }
0x1278   :  { %v2308_v15 = vpop.eup %2307 }
0x1279   :  { %1219 = vrot.lane.b32.xlu0 %v2308_v15, %s2361_s24 }
0x127d   :  { %v2310_v16 = vpop.eup %2309 }
0x127e   :  { %1295 = vrot.lane.b32.xlu1 %v2310_v16, %s2361_s24 }
0x12eb   :  { %v1220_v17 = vpop.permute.xlu0 %1219 }
0x12ec   :  { %v1222_v18 = vmul.f32 %v2304_v63, %v1220_v17 }
0x12ee   :  { %v2715_v19 = vpack.c.bf16 %v1222_v18, %v1222_v18 }
0x12f0   :  { %1300 = vrot.lane.b32.xlu0 %v2715_v19, %s2362_s25  ;;  %v1296_v24 = vpop.permute.xlu1 %1295 }
0x12f1   :  { %v1298_v25 = vmul.f32 %v2306_v5, %v1296_v24 }
0x12f3   :  { %v1299_v26 = vpack.c.bf16 %v1298_v25, %v1298_v25 }
0x12f5   :  { %1346 = vrot.lane.b32.xlu1 %v1299_v26, %s2362_s25 }
0x1362   :  { %v1301_v27 = vpop.permute.xlu0 %1300 }
0x1363   :  { %2137 = vmatmul.mubr.msk.bf16.vlgmr.msra.gmra.mrb[36].mxu1 %vm47_vm1, %v1301_v27 }
0x1364   :  { %2149 = vmatpush3.bf16.msra.mxu1 %v2724_v28  ;;  %2152 = vmatprep.mubr.msk.bf16.mxu1 %vm2359_vm0, %v2358_v0 }
0x1365   :  { %2150 = vmatprep.subr.bf16.mxu1 %v2358_v0 }
0x1367   :  { %v1347_v29 = vpop.permute.xlu1 %1346 }
0x1368   :  { %2151 = vmatpush3.bf16.msra.mxu1 %v2733_v30  ;;  %2145 = vmatmul.mubr.msk.bf16.vlgmr.msra.gmra.mrb[40].mxu0 %vm47_vm1, %v1347_v29 }
0x1369   :  { %2157 = vmatpush3.bf16.msra.mxu0 %v2740_v31  ;;  %2164 = vmatprep.subr.bf16.mxu1 %v2358_v0 }
0x136a   :  { %2158 = vmatprep.subr.bf16.mxu0 %v2358_v0  ;;  %2160 = vmatprep.mubr.msk.bf16.mxu0 %vm2359_vm0, %v2358_v0 }
0x136b   :  { %2153 = vmatmul.mubr.msk.bf16.vlgmr.msra.gmra.mrb[40].mxu1 %vm47_vm1, %v1347_v29 }
0x136c   :  { %2165 = vmatpush3.bf16.msra.mxu1 %v2751_v32  ;;  %2168 = vmatprep.mubr.msk.bf16.mxu1 %vm2359_vm0, %v2358_v0 }
0x136d   :  { %2159 = vmatpush3.bf16.msra.mxu0 %v2759_v33  ;;  %2166 = vmatprep.subr.bf16.mxu1 %v2358_v0 }
0x136e   :  { %2172 = vmatprep.subr.bf16.mxu0 %v2358_v0 }
0x1370   :  { %2167 = vmatpush3.bf16.msra.mxu1 %v2767_v35 }
0x1371   :  { %2180 = vmatprep.subr.bf16.mxu1 %v2358_v0 }
0x1436   :  { %v1339_v36 = vpop.f32.mrb[36].mxu1 }
0x1437   :  { %v2138_v37 = vpop.f32.mrb[37].mxu1 }
0x1438   :  { %v1342_v39 = vpop.f32.mrb[38].mxu1 }
0x1439   :  { %v2139_v40 = vpop.f32.mrb[39].mxu1 }
0x143b   :  { %v1385_v41 = vpop.f32.mrb[40].mxu0 }
0x143c   :  { %v1386_v1 = vadd.f32 %v1385_v41, %v1339_v36  ;;  %v2146_v2 = vpop.f32.mrb[41].mxu0 }
0x143d   :  { %v1388_v42 = vpop.f32.mrb[42].mxu0 }
0x143e   :  { %v1391_v21 = vadd.f32 %v2479_v34, %v1386_v1  ;;  %v1461_v44 = vpop.f32.mrb[40].mxu1  ;;  %v2147_v45 = vpop.f32.mrb[43].mxu0 }
0x143f   :  { %v1467_v46 = vadd.f32 %v1874_v20, %v1461_v44  ;;  %v2154_v47 = vpop.f32.mrb[41].mxu1 }
0x1440   :  { %2311 = vtanh.f32 %v1391_v21  ;;  %v1464_v22 = vpop.f32.mrb[42].mxu1  ;;  %v1871_v50 = vmul.f32 -1.442695, %v1391_v21 }
0x1441   :  { %2313 = vtanh.f32 %v1467_v46  ;;  %v2155_v48 = vpop.f32.mrb[43].mxu1  ;;  %v1876_v51 = vmul.f32 -1.442695, %v1467_v46 }
0x1442   :  { %2315 = vpow2.f32 %v1871_v50 }
0x1443   :  { %2317 = vpow2.f32 %v1876_v51 }
0x144a   :  { %v2312_v49 = vpop.eup %2311 }
0x144b   :  { %v2314_v23 = vpop.eup %2313  ;;  %1401 = vrot.lane.b32.xlu0 %v2312_v49, %s2361_s24 }
0x144c   :  { %1477 = vrot.lane.b32.xlu1 %v2314_v23, %s2361_s24  ;;  %v2316_v52 = vpop.eup %2315 }
0x144d   :  { %v2318_v34 = vpop.eup %2317  ;;  %v1395_v54 = vadd.f32 1.0, %v2316_v52 }
0x144e   :  { %v1471_v55 = vadd.f32 1.0, %v2318_v34 }
0x144f   :  { %2319 = vrcp.f32 %v1395_v54 }
0x1450   :  { %2321 = vrcp.f32 %v1471_v55 }
0x1459   :  { %v2320_v56 = vpop.eup %2319 }
0x145a   :  { %v2322_v58 = vpop.eup %2321  ;;  %v1399_v63 = vmul.f32 %v2320_v56, %v2706_v10 }
0x145b   :  { %v1475_v3 = vmul.f32 %v2322_v58, %v2710_v14 }
0x14bd   :  { %v1402_v57 = vpop.permute.xlu0 %1401 }
0x14be   :  { %v1478_v59 = vpop.permute.xlu1 %1477  ;;  %v1404_v61 = vmul.f32 %v2320_v56, %v1402_v57 }
0x14bf   :  { %v1480_v62 = vmul.f32 %v2322_v58, %v1478_v59 }
0x14c0   :  { %1406 = vrot.lane.b32.xlu0 %v1404_v61, %s2362_s25 }
0x14c1   :  { %1482 = vrot.lane.b32.xlu1 %v1480_v62, %s2362_s25 }
0x1532   :  { %v1407_v4 = vpop.permute.xlu0 %1406 }
0x1533   :  { %v1483_v5 = vpop.permute.xlu1 %1482  ;;  %v2781_v6 = vadd.f32 %v1407_v4, %v1399_v63 }
0x1534   :  { %v2783_v7 = vadd.f32 %v1483_v5, %v1475_v3 }
0x1535   :  { %2323 = vtanh.f32 %v2781_v6 }
0x1536   :  { %2325 = vtanh.f32 %v2783_v7 }
0x153f   :  { %v2324_v8 = vpop.eup %2323 }
0x1540   :  { %v2326_v9 = vpop.eup %2325  ;;  %1412 = vrot.lane.b32.xlu0 %v2324_v8, %s2361_s24 }
0x1541   :  { %1488 = vrot.lane.b32.xlu1 %v2326_v9, %s2361_s24 }
0x15b2   :  { %v1413_v11 = vpop.permute.xlu0 %1412 }
0x15b3   :  { %v1489_v10 = vpop.permute.xlu1 %1488  ;;  %v1415_v13 = vmul.f32 %v2320_v56, %v1413_v11 }
0x15b4   :  { %v1491_v14 = vmul.f32 %v2322_v58, %v1489_v10 }
0x15b5   :  { %v2789_v15 = vpack.c.bf16 %v1415_v13, %v1415_v13 }
0x15b6   :  { %v1492_v16 = vpack.c.bf16 %v1491_v14, %v1491_v14 }
0x15b7   :  { %1493 = vrot.lane.b32.xlu0 %v2789_v15, %s2362_s25 }
0x15b8   :  { %1539 = vrot.lane.b32.xlu1 %v1492_v16, %s2362_s25 }
0x1629   :  { %v1494_v17 = vpop.permute.xlu0 %1493 }
0x162a   :  { %v1540_v18 = vpop.permute.xlu1 %1539  ;;  %2161 = vmatmul.mubr.msk.bf16.vlgmr.msra.gmra.mrb[44].mxu0 %vm47_vm1, %v1494_v17 }
0x162b   :  { %2169 = vmatmul.mubr.msk.bf16.vlgmr.msra.gmra.mrb[44].mxu1 %vm47_vm1, %v1540_v18  ;;  %2173 = vmatpush3.bf16.msra.mxu0 %v2724_v28 }
0x162c   :  { %2174 = vmatprep.subr.bf16.mxu0 %v2358_v0  ;;  %2176 = vmatprep.mubr.msk.bf16.mxu0 %vm2359_vm0, %v2358_v0 }
0x162d   :  { %2181 = vmatpush3.bf16.msra.mxu1 %v2740_v31  ;;  %2184 = vmatprep.mubr.msk.bf16.mxu1 %vm2359_vm0, %v2358_v0 }
0x162e   :  { %2182 = vmatprep.subr.bf16.mxu1 %v2358_v0 }
0x162f   :  { %2175 = vmatpush3.bf16.msra.mxu0 %v2733_v30 }
0x1630   :  { %2188 = vmatprep.subr.bf16.mxu0 %v2358_v0 }
0x1631   :  { %2183 = vmatpush3.bf16.msra.mxu1 %v2759_v33  ;;  %v2816_v33 = vld [vmem:[%s2894_s4] ss:$0 sm:$0xff] }
0x1632   :  { %2177 = vmatmul.mubr.msk.bf16.vlgmr.msra.gmra.mrb[48].mxu0 %vm47_vm1, %v1540_v18 }
0x1633   :  { %2189 = vmatpush3.bf16.msra.mxu0 %v2751_v32  ;;  %2192 = vmatprep.mubr.msk.bf16.mxu0 %vm2359_vm0, %v2358_v0 }
0x1634   :  { %2190 = vmatprep.subr.bf16.mxu0 %v2358_v0  ;;  %v1882_v0 = vld [vmem:[%s2891_s0 + $0x40] sm:$0xff] }
0x1637   :  { %2191 = vmatpush3.bf16.msra.mxu0 %v2767_v35 }
0x16fd   :  { %v1532_v24 = vpop.f32.mrb[44].mxu0 }
0x16fe   :  { %v1578_v25 = vpop.f32.mrb[44].mxu1  ;;  %v2162_v26 = vpop.f32.mrb[45].mxu0 }
0x16ff   :  { %v1579_v27 = vadd.f32 %v1578_v25, %v1532_v24  ;;  %v2170_v28 = vpop.f32.mrb[45].mxu1  ;;  %v1535_v29 = vpop.f32.mrb[46].mxu0 }
0x1700   :  { %v1581_v30 = vpop.f32.mrb[46].mxu1  ;;  %v2163_v31 = vpop.f32.mrb[47].mxu0 }
0x1701   :  { %v1584_v32 = vadd.f32 %v2816_v33, %v1579_v27  ;;  %v2171_v36 = vpop.f32.mrb[47].mxu1 }
0x1703   :  { %2327 = vtanh.f32 %v1584_v32  ;;  %v1879_v20 = vmul.f32 -1.442695, %v1584_v32 }
0x1705   :  { %v1654_v35 = vpop.f32.mrb[48].mxu0 }
0x1706   :  { %v1660_v37 = vadd.f32 %v1882_v0, %v1654_v35  ;;  %v2178_v39 = vpop.f32.mrb[49].mxu0 }
0x1707   :  { %v1657_v40 = vpop.f32.mrb[50].mxu0 }
0x1708   :  { %2329 = vtanh.f32 %v1660_v37  ;;  %v2179_v41 = vpop.f32.mrb[51].mxu0  ;;  %v1884_v42 = vmul.f32 -1.442695, %v1660_v37 }
0x1709   :  { %2331 = vpow2.f32 %v1879_v20 }
0x170a   :  { %2333 = vpow2.f32 %v1884_v42 }
0x170d   :  { %v2328_v1 = vpop.eup %2327 }
0x170e   :  { %1594 = vrot.lane.b32.xlu0 %v2328_v1, %s2361_s24 }
0x1712   :  { %v2330_v2 = vpop.eup %2329 }
0x1713   :  { %1670 = vrot.lane.b32.xlu1 %v2330_v2, %s2361_s24  ;;  %v2332_v21 = vpop.eup %2331 }
0x1714   :  { %v1588_v44 = vadd.f32 1.0, %v2332_v21  ;;  %v2334_v45 = vpop.eup %2333 }
0x1715   :  { %v1664_v46 = vadd.f32 1.0, %v2334_v45 }
0x1716   :  { %2335 = vrcp.f32 %v1588_v44 }
0x1717   :  { %2337 = vrcp.f32 %v1664_v46 }
0x1720   :  { %v2336_v47 = vpop.eup %2335 }
0x1721   :  { %v2338_v49 = vpop.eup %2337  ;;  %v1592_v51 = vmul.f32 %v2336_v47, %v2781_v6 }
0x1722   :  { %v1668_v54 = vmul.f32 %v2338_v49, %v2783_v7 }
0x1780   :  { %v1595_v22 = vpop.permute.xlu0 %1594 }
0x1781   :  { %v1597_v48 = vmul.f32 %v2336_v47, %v1595_v22 }
0x1783   :  { %1599 = vrot.lane.b32.xlu0 %v1597_v48, %s2362_s25 }
0x1785   :  { %v1671_v23 = vpop.permute.xlu1 %1670 }
0x1786   :  { %v1673_v50 = vmul.f32 %v2338_v49, %v1671_v23 }
0x1788   :  { %1675 = vrot.lane.b32.xlu1 %v1673_v50, %s2362_s25 }
0x17f5   :  { %v1600_v52 = vpop.permute.xlu0 %1599 }
0x17f6   :  { %v1602_v34 = vadd.f32 %v1600_v52, %v1592_v51 }
0x17f8   :  { %2339 = vtanh.f32 %v1602_v34 }
0x17fa   :  { %v1676_v55 = vpop.permute.xlu1 %1675 }
0x17fb   :  { %v1678_v56 = vadd.f32 %v1676_v55, %v1668_v54 }
0x17fd   :  { %2341 = vtanh.f32 %v1678_v56 }
0x1802   :  { %v2340_v57 = vpop.eup %2339 }
0x1803   :  { %1605 = vrot.lane.b32.xlu0 %v2340_v57, %s2361_s24 }
0x1807   :  { %v2342_v58 = vpop.eup %2341 }
0x1808   :  { %1681 = vrot.lane.b32.xlu1 %v2342_v58, %s2361_s24 }
0x1875   :  { %v1606_v59 = vpop.permute.xlu0 %1605 }
0x1876   :  { %v1608_v61 = vmul.f32 %v2336_v47, %v1606_v59 }
0x1878   :  { %v1609_v62 = vpack.c.bf16 %v1608_v61, %v1608_v61 }
0x187a   :  { %1686 = vrot.lane.b32.xlu0 %v1609_v62, %s2362_s25  ;;  %v1682_v63 = vpop.permute.xlu1 %1681 }
0x187b   :  { %v1684_v3 = vmul.f32 %v2338_v49, %v1682_v63 }
0x187d   :  { %v1685_v4 = vpack.c.bf16 %v1684_v3, %v1684_v3 }
0x187f   :  { %1732 = vrot.lane.b32.xlu1 %v1685_v4, %s2362_s25 }
0x18ec   :  { %v1687_v5 = vpop.permute.xlu0 %1686 }
0x18ed   :  { %2185 = vmatmul.mubr.msk.bf16.vlgmr.msra.gmra.mrb[48].mxu1 %vm47_vm1, %v1687_v5 }
0x18f1   :  { %v1733_v6 = vpop.permute.xlu1 %1732 }
0x18f2   :  { %2193 = vmatmul.mubr.msk.bf16.vlgmr.msra.gmra.mrb[52].mxu0 %vm47_vm1, %v1733_v6 }
0x19c0   :  { %v1725_v7 = vpop.f32.mrb[48].mxu1 }
0x19c1   :  { %v2186_v8 = vpop.f32.mrb[49].mxu1 }
0x19c2   :  { %v1728_v9 = vpop.f32.mrb[50].mxu1 }
0x19c3   :  { %v2187_v11 = vpop.f32.mrb[51].mxu1 }
0x19c5   :  { %v1771_v10 = vpop.f32.mrb[52].mxu0 }
0x19c6   :  { %v1772_v13 = vadd.f32 %v1771_v10, %v1725_v7  ;;  %v2194_v14 = vpop.f32.mrb[53].mxu0 }
0x19c7   :  { %v1774_v16 = vpop.f32.mrb[54].mxu0 }
0x19c8   :  { %v1777_v17 = vadd.f32 %v2816_v33, %v1772_v13  ;;  %v2195_v18 = vpop.f32.mrb[55].mxu0 }
0x19ca   :  { %2343 = vtanh.f32 %v1777_v17  ;;  %v1887_v25 = vmul.f32 -1.442695, %v1777_v17 }
0x19cc   :  { %2345 = vpow2.f32 %v1887_v25 }
0x19d4   :  { %v2344_v24 = vpop.eup %2343 }
0x19d5   :  { %1787 = vrot.lane.b32.xlu0 %v2344_v24, %s2361_s24 }
0x19d6   :  { %v2346_v26 = vpop.eup %2345 }
0x19d7   :  { %v1781_v27 = vadd.f32 1.0, %v2346_v26 }
0x19d9   :  { %2347 = vrcp.f32 %v1781_v27 }
0x19e3   :  { %v2348_v28 = vpop.eup %2347 }
0x19e4   :  { %v1785_v31 = vmul.f32 %v2348_v28, %v1602_v34 }
0x1a47   :  { %v1788_v29 = vpop.permute.xlu0 %1787 }
0x1a48   :  { %v1790_v30 = vmul.f32 %v2348_v28, %v1788_v29 }
0x1a4a   :  { %1792 = vrot.lane.b32.xlu1 %v1790_v30, %s2362_s25 }
0x1a4e   :  { %262 = vrot.lane.b32.xlu1 %v2495_v12, %s2362_s25 }
0x1a52   :  { %648 = vrot.lane.b32.xlu1 %v2583_v53, %s2362_s25 }
0x1a56   :  { %1034 = vrot.lane.b32.xlu1 %v2671_v38, %s2362_s25 }
0x1a5a   :  { %1420 = vrot.lane.b32.xlu1 %v2789_v15, %s2362_s25 }
0x1abc   :  { %v1793_v33 = vpop.permute.xlu1 %1792 }
0x1abd   :  { %v1795_v32 = vadd.f32 %v1793_v33, %v1785_v31 }
0x1abf   :  { %2349 = vtanh.f32 %v1795_v32 }
0x1ac0   :  { %v263_v36 = vpop.permute.xlu1 %262 }
0x1ac1   :  { %266 = vst.msk [vmem:[%s2895_s5] sm:$0xf] %vm265_vm2, %v263_v36 }
0x1ac4   :  { %v649_v12 = vpop.permute.xlu1 %648 }
0x1ac5   :  { %1841 = vst.msk [vmem:[%s2895_s5 + $0x8] sm:$0xf] %vm265_vm2, %v649_v12 }
0x1ac8   :  { %v1035_v53 = vpop.permute.xlu1 %1034 }
0x1ac9   :  { %v2350_v38 = vpop.eup %2349  ;;  %1857 = vst.msk [vmem:[%s2895_s5 + $0x10] sm:$0xf] %vm265_vm2, %v1035_v53 }
0x1aca   :  { %1798 = vrot.lane.b32.xlu0 %v2350_v38, %s2361_s24 }
0x1acc   :  { %v1421_v15 = vpop.permute.xlu1 %1420 }
0x1acd   :  { %1873 = vst.msk [vmem:[%s2895_s5 + $0x18] sm:$0xf] %vm265_vm2, %v1421_v15 }
0x1ace   :  { %455 = vrot.lane.b32.xlu0 %v2539_v60, %s2362_s25 }
0x1ad2   :  { %841 = vrot.lane.b32.xlu0 %v2627_v43, %s2362_s25 }
0x1ad6   :  { %1227 = vrot.lane.b32.xlu0 %v2715_v19, %s2362_s25 }
0x1ada   :  { %1613 = vrot.lane.b32.xlu0 %v1609_v62, %s2362_s25 }
0x1b3c   :  { %v1799_v0 = vpop.permute.xlu0 %1798 }
0x1b3d   :  { %v1801_v35 = vmul.f32 %v2348_v28, %v1799_v0 }
0x1b3f   :  { %v1898_v37 = vpack.c.bf16 %v1801_v35, %v1801_v35 }
0x1b40   :  { %v456_v39 = vpop.permute.xlu0 %455 }
0x1b41   :  { %1833 = vst.msk [vmem:[%s2895_s5 + $0x4] sm:$0xf] %vm265_vm2, %v456_v39  ;;  %1806 = vrot.lane.b32.xlu1 %v1898_v37, %s2362_s25 }
0x1b44   :  { %v842_v60 = vpop.permute.xlu0 %841 }
0x1b45   :  { %1849 = vst.msk [vmem:[%s2895_s5 + $0xc] sm:$0xf] %vm265_vm2, %v842_v60 }
0x1b48   :  { %v1228_v43 = vpop.permute.xlu0 %1227 }
0x1b49   :  { %1865 = vst.msk [vmem:[%s2895_s5 + $0x14] sm:$0xf] %vm265_vm2, %v1228_v43 }
0x1b4c   :  { %v1614_v19 = vpop.permute.xlu0 %1613 }
0x1b4d   :  { %1881 = vst.msk [vmem:[%s2895_s5 + $0x1c] sm:$0xf] %vm265_vm2, %v1614_v19 }
0x1bb3   :  { %v1807_v40 = vpop.permute.xlu1 %1806 }
0x1bb4   :  { %1889 = vst.msk [vmem:[%s2895_s5 + $0x20] sm:$0xf] %vm265_vm2, %v1807_v40 }

</bundles_post_ra>
